<compile_context>
chip_gen: v7x
topology: tpu7x:2x2x1
jax: 0.10.0
libtpu: 0.0.40
codegen_flags: <defaults>
</compile_context>

<pallas_src>
import functools

import jax
import jax.numpy as jnp
from jax.experimental import pallas as pl
from jax.experimental.pallas import tpu as pltpu

NUM_ITERATIONS = 3
NUM_SLOTS = 8
D_MODEL = 32
EPSILON = 1e-8
LN_EPS = 1e-5  # PyTorch nn.LayerNorm default eps

# Row indices of the packed (16, 2D) parameter table.  Rows 0..10 hold D-wide
# vectors in lanes [:D]; row _BKV holds the fused [bk | bv] bias in lanes [:2D].
_GIN, _BIN, _GS, _BS, _GM, _BM, _GO, _BO, _BQ, _B1, _B2, _BKV = range(12)
_PROWS = 16  # padded to a multiple of 8 sublanes


def _layer_norm(x, g, b, eps=LN_EPS):
    mean = jnp.mean(x, axis=-1, keepdims=True)
    var = jnp.mean((x - mean) ** 2, axis=-1, keepdims=True)
    return (x - mean) * jax.lax.rsqrt(var + eps) * g + b


def slot_attention_kernel(
    x_ref,       # (Bt*N, D)   token rows, flattened over the batch tile
    mask_ref,    # (Bt, 1, N)  float32, 1.0 == masked token
    slots0_ref,  # (S, D)      learned slot init
    wkv_ref,     # (D, 2D)     fused [wk | wv]
    wstack_ref,  # (3, D, D)   [wq, w1, w2]
    pvec_ref,    # (16, 2D)    LN gains/biases + projection biases (row table)
    out_ref,     # (Bt, S, D)
    *, num_iterations, epsilon, bt, n_tok, n_slots):
    d = x_ref.shape[-1]
    scale = d ** (-0.5)
    max_neg = -float(jnp.finfo(jnp.float32).max)

    # ---- unpack packed params (static sublane/lane slices) ------------------
    p = pvec_ref[...]
    gin, b_in = p[_GIN:_GIN + 1, :d], p[_BIN:_BIN + 1, :d]
    gs, bs = p[_GS:_GS + 1, :d], p[_BS:_BS + 1, :d]
    gm, bm = p[_GM:_GM + 1, :d], p[_BM:_BM + 1, :d]
    go, bo = p[_GO:_GO + 1, :d], p[_BO:_BO + 1, :d]
    bq = p[_BQ:_BQ + 1, :d]
    b1, b2 = p[_B1:_B1 + 1, :d], p[_B2:_B2 + 1, :d]
    bkv = p[_BKV:_BKV + 1]            # (1, 2D) fused [bk | bv]
    wq, w1, w2 = wstack_ref[0], wstack_ref[1], wstack_ref[2]

    # ---- iteration-invariant work, flattened over all Bt*N token rows -------
    x = _layer_norm(x_ref[...], gin, b_in)                              # (Bt*N, D)
    kv = jnp.dot(x, wkv_ref[...], preferred_element_type=jnp.float32) + bkv
    k3 = kv[:, :d].reshape(bt, n_tok, d)                                # (Bt, N, D)
    v3 = kv[:, d:].reshape(bt, n_tok, d)                                # (Bt, N, D)

    # Hoisted mask broadcast (JAX does not CSE broadcast_in_dim in loops).
    masked = jnp.broadcast_to(mask_ref[...], (bt, n_slots, n_tok)) > 0.5

    slots = jnp.broadcast_to(slots0_ref[...], (bt, n_slots, d)).reshape(
        bt * n_slots, d)                                                # (Bt*S, D)

    for _ in range(num_iterations):
        slots_prev = slots
        s_n = _layer_norm(slots, gs, bs)
        q = jnp.dot(s_n, wq, preferred_element_type=jnp.float32) + bq   # (Bt*S, D)
        q3 = q.reshape(bt, n_slots, d)
        # Direct bid,bjd->bij: lowers to a batched MXU matmul, no XLU transpose.
        dots = jnp.einsum("bid,bjd->bij", q3, k3,
                          preferred_element_type=jnp.float32) * scale   # (Bt, S, N)
        dots = jnp.where(masked, max_neg, dots)                         # masked_fill_
        # softmax over the SLOT axis (torch dim=1 of (B, S, N))
        dots = dots - jnp.max(dots, axis=1, keepdims=True)
        e = jnp.exp(dots)
        attn = e * pl.reciprocal(jnp.sum(e, axis=1, keepdims=True), approx=True)
        # weighted-mean normalization over tokens
        attn = attn * pl.reciprocal(
            jnp.sum(attn, axis=2, keepdims=True) + epsilon, approx=True)
        upd = jnp.einsum("bij,bjd->bid", attn, v3,
                         preferred_element_type=jnp.float32)            # (Bt, S, D)
        slots = slots_prev + upd.reshape(bt * n_slots, d)
        # residual MLP: Linear -> ReLU -> Linear
        h = _layer_norm(slots, gm, bm)
        h = jnp.maximum(
            jnp.dot(h, w1, preferred_element_type=jnp.float32) + b1, 0.0)
        h = jnp.dot(h, w2, preferred_element_type=jnp.float32) + b2
        slots = slots + h

    out_ref[...] = _layer_norm(slots, go, bo).reshape(bt, n_slots, d)


def slot_attention(inputs, mask, params, *,
                   num_iterations=NUM_ITERATIONS, epsilon=EPSILON,
                   block_b=256, min_grid_steps=2):
    B, N, D = inputs.shape
    S = params["slots"].shape[0]

    # Batch tile: go as fat as block_b allows (VMEM headroom is enormous at
    # these shapes on every generation), but keep >= min_grid_steps grid steps
    # so ("parallel",) can shard the grid across v7x's two TensorCores.
    if B <= 1:
        Bt = max(B, 1)
    else:
        Bt = max(1, min(block_b, pl.cdiv(B, min_grid_steps)))
    Bp = pl.cdiv(B, Bt) * Bt
    if Bp != B:
        pad = Bp - B
        inputs = jnp.pad(inputs, ((0, pad), (0, 0), (0, 0)))
        mask = jnp.pad(mask, ((0, pad), (0, 0)))      # padded rows: unmasked

    x2d = inputs.astype(jnp.float32).reshape(Bp * N, D)
    mask_f = mask.astype(jnp.float32).reshape(Bp, 1, N)

    # ---- pack the 19 tiny parameters into 3 arrays --------------------------
    wkv = jnp.concatenate([params["wk"], params["wv"]], axis=1)     # (D, 2D)
    wstack = jnp.stack([params["wq"], params["w1"], params["w2"]])  # (3, D, D)
    rows_d = jnp.concatenate(
        [params["gin"], params["bin"], params["gs"], params["bs"],
         params["gm"], params["bm"], params["go"], params["bo"],
         params["bq"], params["b1"], params["b2"]], axis=0)         # (11, D)
    rows_d = jnp.pad(rows_d, ((0, 0), (0, D)))                      # (11, 2D)
    bkv = jnp.concatenate([params["bk"], params["bv"]], axis=1)     # (1, 2D)
    pvec = jnp.concatenate([rows_d, bkv], axis=0)                   # (12, 2D)
    pvec = jnp.pad(pvec, ((0, _PROWS - pvec.shape[0]), (0, 0)))     # (16, 2D)

    kernel = functools.partial(
        slot_attention_kernel, num_iterations=num_iterations, epsilon=epsilon,
        bt=Bt, n_tok=N, n_slots=S)

    out = pl.pallas_call(
        kernel,
        grid=(Bp // Bt,),
        in_specs=[
            pl.BlockSpec((Bt * N, D), lambda b: (b, 0)),       # x (flattened)
            pl.BlockSpec((Bt, 1, N), lambda b: (b, 0, 0)),     # mask
            pl.BlockSpec((S, D), lambda b: (0, 0)),            # slots init
            pl.BlockSpec((D, 2 * D), lambda b: (0, 0)),        # fused wk|wv
            pl.BlockSpec((3, D, D), lambda b: (0, 0, 0)),      # wq, w1, w2
            pl.BlockSpec((_PROWS, 2 * D), lambda b: (0, 0)),   # biases / LN
        ],
        out_specs=pl.BlockSpec((Bt, S, D), lambda b: (b, 0, 0)),
        out_shape=jax.ShapeDtypeStruct((Bp, S, D), jnp.float32),
        compiler_params=pltpu.CompilerParams(
            dimension_semantics=("parallel",)),
    )(x2d, mask_f, params["slots"], wkv, wstack, pvec)
    return out[:B]


def init_params(key, num_slots=NUM_SLOTS, d=D_MODEL):
    ks = jax.random.split(key, 16)

    def xavier(k, shape):
        fan = sum(shape)
        return (jax.random.normal(k, shape) * (2.0 / fan) ** 0.5).astype(jnp.float32)

    p = {}
    p["slots"] = xavier(ks[0], (num_slots, d))                 # nn.Parameter, xavier_normal_
    # Linear layers stored as (in, out); y = x @ W + b
    p["wq"], p["bq"] = xavier(ks[1], (d, d)), 0.02 * jax.random.normal(ks[2], (1, d)).astype(jnp.float32)
    p["wk"], p["bk"] = xavier(ks[3], (d, d)), 0.02 * jax.random.normal(ks[4], (1, d)).astype(jnp.float32)
    p["wv"], p["bv"] = xavier(ks[5], (d, d)), 0.02 * jax.random.normal(ks[6], (1, d)).astype(jnp.float32)
    p["w1"], p["b1"] = xavier(ks[7], (d, d)), 0.02 * jax.random.normal(ks[8], (1, d)).astype(jnp.float32)
    p["w2"], p["b2"] = xavier(ks[9], (d, d)), 0.02 * jax.random.normal(ks[10], (1, d)).astype(jnp.float32)
    # LayerNorm affine params (non-trivial so the kernel exercises them)
    for i, name in enumerate(["in", "s", "m", "o"]):
        p["g" + name] = (1.0 + 0.05 * jax.random.normal(ks[11 + i], (1, d))).astype(jnp.float32)
        p["b" + name] = (0.05 * jax.random.normal(ks[15], (1, d)) * (i + 1)).astype(jnp.float32)
    return p


def slot_attention_ref(inputs, mask, params, *,
                       num_iterations=NUM_ITERATIONS, epsilon=EPSILON):
    """Pure-JAX reference matching the PyTorch forward semantics."""
    B, N, D = inputs.shape
    x = _layer_norm(inputs, params["gin"], params["bin"])
    k = x @ params["wk"] + params["bk"]
    v = x @ params["wv"] + params["bv"]
    slots = jnp.broadcast_to(params["slots"], (B,) + params["slots"].shape)
    mask_b = mask[:, None, :]
    max_neg = -float(jnp.finfo(jnp.float32).max)
    scale = D ** (-0.5)
    for _ in range(num_iterations):
        slots_prev = slots
        s_n = _layer_norm(slots, params["gs"], params["bs"])
        q = s_n @ params["wq"] + params["bq"]
        dots = jnp.einsum("bid,bjd->bij", q, k) * scale
        dots = jnp.where(mask_b, max_neg, dots)
        attn = jax.nn.softmax(dots, axis=1)
        attn = attn / (jnp.sum(attn, axis=-1, keepdims=True) + epsilon)
        updates = jnp.einsum("bjd,bij->bid", v, attn)
        slots = slots_prev + updates
        h = _layer_norm(slots, params["gm"], params["bm"])
        h = jnp.maximum(h @ params["w1"] + params["b1"], 0.0)
        h = h @ params["w2"] + params["b2"]
        slots = slots + h
    return _layer_norm(slots, params["go"], params["bo"])


if __name__ == "__main__":
    key = jax.random.PRNGKey(0)
    kx, km, kp = jax.random.split(key, 3)

    # B=7 with the default (large) block_b exercises the Bt cap at ceil(B/2)=4,
    # a 2-step grid (shardable across v7x's two TensorCores), batching within a
    # tile, and the batch-padding path (Bp=8).
    B, N = 7, 16
    inputs = jax.random.normal(kx, (B, N, D_MODEL), jnp.float32)
    mask = jax.random.bernoulli(km, 0.25, (B, N))   # True == masked position
    params = init_params(kp)

    out = slot_attention(inputs, mask, params)
    out = jax.block_until_ready(out)
    assert out.shape == (B, NUM_SLOTS, D_MODEL)

    ref = slot_attention_ref(inputs, mask, params)
    max_err = float(jnp.max(jnp.abs(out - ref)))
    if not bool(jnp.allclose(out, ref, atol=1e-2, rtol=1e-2)):
        raise AssertionError(f"Pallas kernel mismatch vs reference, max abs err {max_err}")

    print("KERNEL_OK")
</pallas_src>

<mosaic_0001>
module attributes {stable_mosaic.version = 11 : i64} {
  func.func @slot_attention_kernel(%arg0: i32, %arg1: memref<64x32xf32, #tpu.memory_space<vmem>>, %arg2: memref<4x1x16xf32, #tpu.memory_space<vmem>>, %arg3: memref<8x32xf32, #tpu.memory_space<vmem>>, %arg4: memref<32x64xf32, #tpu.memory_space<vmem>>, %arg5: memref<3x32x32xf32, #tpu.memory_space<vmem>>, %arg6: memref<16x64xf32, #tpu.memory_space<vmem>>, %arg7: memref<4x8x32xf32, #tpu.memory_space<vmem>>) attributes {dimension_semantics = [#tpu.dimension_semantics<parallel>], iteration_bounds = array<i64: 2>, scalar_prefetch = 0 : i64, scratch_operands = 0 : i64, tpu.core_type = #tpu.core_type<tc>, window_params = [{transform_indices = @transform_0, window_bounds = array<i64: 64, 32>}, {transform_indices = @transform_1, window_bounds = array<i64: 4, 1, 16>}, {pipeline_mode = #tpu.pipeline_mode<synchronous>, transform_indices = @transform_2, window_bounds = array<i64: 8, 32>}, {pipeline_mode = #tpu.pipeline_mode<synchronous>, transform_indices = @transform_3, window_bounds = array<i64: 32, 64>}, {pipeline_mode = #tpu.pipeline_mode<synchronous>, transform_indices = @transform_4, window_bounds = array<i64: 3, 32, 32>}, {pipeline_mode = #tpu.pipeline_mode<synchronous>, transform_indices = @transform_5, window_bounds = array<i64: 16, 64>}, {transform_indices = @transform_6, window_bounds = array<i64: 4, 8, 32>}]} {
    %c0 = arith.constant 0 : index
    %c0_0 = arith.constant 0 : index
    %0 = vector.load %arg6[%c0, %c0_0] : memref<16x64xf32, #tpu.memory_space<vmem>>, vector<16x64xf32>
    %1 = vector.extract_strided_slice %0 {offsets = [0, 0], sizes = [1, 32], strides = [1, 1]} : vector<16x64xf32> to vector<1x32xf32>
    %2 = vector.extract_strided_slice %0 {offsets = [1, 0], sizes = [1, 32], strides = [1, 1]} : vector<16x64xf32> to vector<1x32xf32>
    %3 = vector.extract_strided_slice %0 {offsets = [2, 0], sizes = [1, 32], strides = [1, 1]} : vector<16x64xf32> to vector<1x32xf32>
    %4 = vector.extract_strided_slice %0 {offsets = [3, 0], sizes = [1, 32], strides = [1, 1]} : vector<16x64xf32> to vector<1x32xf32>
    %5 = vector.extract_strided_slice %0 {offsets = [4, 0], sizes = [1, 32], strides = [1, 1]} : vector<16x64xf32> to vector<1x32xf32>
    %6 = vector.extract_strided_slice %0 {offsets = [5, 0], sizes = [1, 32], strides = [1, 1]} : vector<16x64xf32> to vector<1x32xf32>
    %7 = vector.extract_strided_slice %0 {offsets = [6, 0], sizes = [1, 32], strides = [1, 1]} : vector<16x64xf32> to vector<1x32xf32>
    %8 = vector.extract_strided_slice %0 {offsets = [7, 0], sizes = [1, 32], strides = [1, 1]} : vector<16x64xf32> to vector<1x32xf32>
    %9 = vector.extract_strided_slice %0 {offsets = [8, 0], sizes = [1, 32], strides = [1, 1]} : vector<16x64xf32> to vector<1x32xf32>
    %10 = vector.extract_strided_slice %0 {offsets = [9, 0], sizes = [1, 32], strides = [1, 1]} : vector<16x64xf32> to vector<1x32xf32>
    %11 = vector.extract_strided_slice %0 {offsets = [10, 0], sizes = [1, 32], strides = [1, 1]} : vector<16x64xf32> to vector<1x32xf32>
    %12 = vector.extract_strided_slice %0 {offsets = [11, 0], sizes = [1, 64], strides = [1, 1]} : vector<16x64xf32> to vector<1x64xf32>
    %c0_1 = arith.constant 0 : index
    %c0_2 = arith.constant 0 : index
    %c0_3 = arith.constant 0 : index
    %13 = vector.load %arg5[%c0_1, %c0_2, %c0_3] : memref<3x32x32xf32, #tpu.memory_space<vmem>>, vector<1x32x32xf32>
    %14 = vector.shape_cast %13 : vector<1x32x32xf32> to vector<32x32xf32>
    %c1 = arith.constant 1 : index
    %c0_4 = arith.constant 0 : index
    %c0_5 = arith.constant 0 : index
    %15 = vector.load %arg5[%c1, %c0_4, %c0_5] : memref<3x32x32xf32, #tpu.memory_space<vmem>>, vector<1x32x32xf32>
    %16 = vector.shape_cast %15 : vector<1x32x32xf32> to vector<32x32xf32>
    %c2 = arith.constant 2 : index
    %c0_6 = arith.constant 0 : index
    %c0_7 = arith.constant 0 : index
    %17 = vector.load %arg5[%c2, %c0_6, %c0_7] : memref<3x32x32xf32, #tpu.memory_space<vmem>>, vector<1x32x32xf32>
    %18 = vector.shape_cast %17 : vector<1x32x32xf32> to vector<32x32xf32>
    %c0_8 = arith.constant 0 : index
    %c0_9 = arith.constant 0 : index
    %19 = vector.load %arg1[%c0_8, %c0_9] : memref<64x32xf32, #tpu.memory_space<vmem>>, vector<64x32xf32>
    %cst = arith.constant dense<0.000000e+00> : vector<64xf32>
    %20 = vector.multi_reduction <add>, %19, %cst [1] : vector<64x32xf32> to vector<64xf32>
    %21 = vector.shape_cast %20 : vector<64xf32> to vector<64x1xf32>
    %cst_10 = arith.constant 3.200000e+01 : f32
    %22 = vector.broadcast %cst_10 : f32 to vector<64x1xf32>
    %23 = arith.divf %21, %22 : vector<64x1xf32>
    %24 = vector.broadcast %23 : vector<64x1xf32> to vector<64x32xf32>
    %25 = arith.subf %19, %24 : vector<64x32xf32>
    %26 = arith.mulf %25, %25 : vector<64x32xf32>
    %cst_11 = arith.constant dense<0.000000e+00> : vector<64xf32>
    %27 = vector.multi_reduction <add>, %26, %cst_11 [1] : vector<64x32xf32> to vector<64xf32>
    %28 = vector.shape_cast %27 : vector<64xf32> to vector<64x1xf32>
    %cst_12 = arith.constant 3.200000e+01 : f32
    %29 = vector.broadcast %cst_12 : f32 to vector<64x1xf32>
    %30 = arith.divf %28, %29 : vector<64x1xf32>
    %31 = vector.broadcast %23 : vector<64x1xf32> to vector<64x32xf32>
    %32 = arith.subf %19, %31 : vector<64x32xf32>
    %cst_13 = arith.constant 9.99999974E-6 : f32
    %33 = vector.broadcast %cst_13 : f32 to vector<64x1xf32>
    %34 = arith.addf %30, %33 : vector<64x1xf32>
    %35 = math.rsqrt %34 : vector<64x1xf32>
    %36 = vector.broadcast %35 : vector<64x1xf32> to vector<64x32xf32>
    %37 = arith.mulf %32, %36 : vector<64x32xf32>
    %38 = vector.broadcast %1 : vector<1x32xf32> to vector<64x32xf32>
    %39 = arith.mulf %37, %38 : vector<64x32xf32>
    %40 = vector.broadcast %2 : vector<1x32xf32> to vector<64x32xf32>
    %41 = arith.addf %39, %40 : vector<64x32xf32>
    %c0_14 = arith.constant 0 : index
    %c0_15 = arith.constant 0 : index
    %42 = vector.load %arg4[%c0_14, %c0_15] : memref<32x64xf32, #tpu.memory_space<vmem>>, vector<32x64xf32>
    %cst_16 = arith.constant dense<0.000000e+00> : vector<64x64xf32>
    %43 = tpu.matmul %41, %42, %cst_16 {dimension_numbers = #tpu.dot_dimension_numbers<[1], [0], [0], [1], [0, 0, 1, 1], [], []>} : vector<64x32xf32>, vector<32x64xf32>, vector<64x64xf32> -> vector<64x64xf32>
    %44 = vector.broadcast %12 : vector<1x64xf32> to vector<64x64xf32>
    %45 = arith.addf %43, %44 : vector<64x64xf32>
    %46 = vector.extract_strided_slice %45 {offsets = [0, 0], sizes = [64, 32], strides = [1, 1]} : vector<64x64xf32> to vector<64x32xf32>
    %47 = vector.shape_cast %46 : vector<64x32xf32> to vector<4x16x32xf32>
    %48 = vector.extract_strided_slice %45 {offsets = [0, 32], sizes = [64, 32], strides = [1, 1]} : vector<64x64xf32> to vector<64x32xf32>
    %49 = vector.shape_cast %48 : vector<64x32xf32> to vector<4x16x32xf32>
    %c0_17 = arith.constant 0 : index
    %c0_18 = arith.constant 0 : index
    %c0_19 = arith.constant 0 : index
    %50 = vector.load %arg2[%c0_17, %c0_18, %c0_19] : memref<4x1x16xf32, #tpu.memory_space<vmem>>, vector<4x1x16xf32>
    %51 = vector.shape_cast %50 : vector<4x1x16xf32> to vector<4x1x16xf32>
    %52 = vector.broadcast %51 : vector<4x1x16xf32> to vector<4x8x16xf32>
    %cst_20 = arith.constant 5.000000e-01 : f32
    %53 = vector.broadcast %cst_20 : f32 to vector<4x8x16xf32>
    %54 = arith.cmpf ogt, %52, %53 : vector<4x8x16xf32>
    %c0_21 = arith.constant 0 : index
    %c0_22 = arith.constant 0 : index
    %55 = vector.load %arg3[%c0_21, %c0_22] : memref<8x32xf32, #tpu.memory_space<vmem>>, vector<8x32xf32>
    %56 = vector.shape_cast %55 : vector<8x32xf32> to vector<1x8x32xf32>
    %57 = vector.broadcast %56 : vector<1x8x32xf32> to vector<4x8x32xf32>
    %58 = vector.shape_cast %57 : vector<4x8x32xf32> to vector<32x32xf32>
    %cst_23 = arith.constant dense<0.000000e+00> : vector<32xf32>
    %59 = vector.multi_reduction <add>, %58, %cst_23 [1] : vector<32x32xf32> to vector<32xf32>
    %60 = vector.shape_cast %59 : vector<32xf32> to vector<32x1xf32>
    %cst_24 = arith.constant 3.200000e+01 : f32
    %61 = vector.broadcast %cst_24 : f32 to vector<32x1xf32>
    %62 = arith.divf %60, %61 : vector<32x1xf32>
    %63 = vector.broadcast %62 : vector<32x1xf32> to vector<32x32xf32>
    %64 = arith.subf %58, %63 : vector<32x32xf32>
    %65 = arith.mulf %64, %64 : vector<32x32xf32>
    %cst_25 = arith.constant dense<0.000000e+00> : vector<32xf32>
    %66 = vector.multi_reduction <add>, %65, %cst_25 [1] : vector<32x32xf32> to vector<32xf32>
    %67 = vector.shape_cast %66 : vector<32xf32> to vector<32x1xf32>
    %cst_26 = arith.constant 3.200000e+01 : f32
    %68 = vector.broadcast %cst_26 : f32 to vector<32x1xf32>
    %69 = arith.divf %67, %68 : vector<32x1xf32>
    %70 = vector.broadcast %62 : vector<32x1xf32> to vector<32x32xf32>
    %71 = arith.subf %58, %70 : vector<32x32xf32>
    %cst_27 = arith.constant 9.99999974E-6 : f32
    %72 = vector.broadcast %cst_27 : f32 to vector<32x1xf32>
    %73 = arith.addf %69, %72 : vector<32x1xf32>
    %74 = math.rsqrt %73 : vector<32x1xf32>
    %75 = vector.broadcast %74 : vector<32x1xf32> to vector<32x32xf32>
    %76 = arith.mulf %71, %75 : vector<32x32xf32>
    %77 = vector.broadcast %3 : vector<1x32xf32> to vector<32x32xf32>
    %78 = arith.mulf %76, %77 : vector<32x32xf32>
    %79 = vector.broadcast %4 : vector<1x32xf32> to vector<32x32xf32>
    %80 = arith.addf %78, %79 : vector<32x32xf32>
    %cst_28 = arith.constant dense<0.000000e+00> : vector<32x32xf32>
    %81 = tpu.matmul %80, %14, %cst_28 {dimension_numbers = #tpu.dot_dimension_numbers<[1], [0], [0], [1], [0, 0, 1, 1], [], []>} : vector<32x32xf32>, vector<32x32xf32>, vector<32x32xf32> -> vector<32x32xf32>
    %82 = vector.broadcast %9 : vector<1x32xf32> to vector<32x32xf32>
    %83 = arith.addf %81, %82 : vector<32x32xf32>
    %84 = vector.shape_cast %83 : vector<32x32xf32> to vector<4x8x32xf32>
    "tpu.trace_start"() <{level = 10 : i32, message = "bid,bjd->bij"}> : () -> ()
    %cst_29 = arith.constant dense<0.000000e+00> : vector<4x8x16xf32>
    %85 = tpu.matmul %84, %47, %cst_29 {dimension_numbers = #tpu.dot_dimension_numbers<[2], [2], [1], [1], [0, 0, 0, 1, 1, 1], [0], [0]>} : vector<4x8x32xf32>, vector<4x16x32xf32>, vector<4x8x16xf32> -> vector<4x8x16xf32>
    "tpu.trace_stop"() : () -> ()
    %cst_30 = arith.constant 0.176776692 : f32
    %86 = vector.broadcast %cst_30 : f32 to vector<4x8x16xf32>
    %87 = arith.mulf %85, %86 : vector<4x8x16xf32>
    %cst_31 = arith.constant -3.40282347E+38 : f32
    %88 = vector.broadcast %cst_31 : f32 to vector<4x8x16xf32>
    %89 = arith.select %54, %88, %87 : vector<4x8x16xi1>, vector<4x8x16xf32>
    %cst_32 = arith.constant dense<0xFF800000> : vector<4x16xf32>
    %90 = vector.multi_reduction <maximumf>, %89, %cst_32 [1] : vector<4x8x16xf32> to vector<4x16xf32>
    %91 = vector.shape_cast %90 : vector<4x16xf32> to vector<4x1x16xf32>
    %92 = vector.broadcast %91 : vector<4x1x16xf32> to vector<4x8x16xf32>
    %93 = arith.subf %89, %92 : vector<4x8x16xf32>
    %94 = math.exp %93 : vector<4x8x16xf32>
    %cst_33 = arith.constant dense<0.000000e+00> : vector<4x16xf32>
    %95 = vector.multi_reduction <add>, %94, %cst_33 [1] : vector<4x8x16xf32> to vector<4x16xf32>
    %96 = vector.shape_cast %95 : vector<4x16xf32> to vector<4x1x16xf32>
    %97 = tpu.reciprocal %96 {approx = true} : vector<4x1x16xf32> -> vector<4x1x16xf32>
    %98 = vector.broadcast %97 : vector<4x1x16xf32> to vector<4x8x16xf32>
    %99 = arith.mulf %94, %98 : vector<4x8x16xf32>
    %cst_34 = arith.constant dense<0.000000e+00> : vector<4x8xf32>
    %100 = vector.multi_reduction <add>, %99, %cst_34 [2] : vector<4x8x16xf32> to vector<4x8xf32>
    %101 = vector.shape_cast %100 : vector<4x8xf32> to vector<4x8x1xf32>
    %cst_35 = arith.constant 9.99999993E-9 : f32
    %102 = vector.broadcast %cst_35 : f32 to vector<4x8x1xf32>
    %103 = arith.addf %101, %102 : vector<4x8x1xf32>
    %104 = tpu.reciprocal %103 {approx = true} : vector<4x8x1xf32> -> vector<4x8x1xf32>
    %105 = vector.broadcast %104 : vector<4x8x1xf32> to vector<4x8x16xf32>
    %106 = arith.mulf %99, %105 : vector<4x8x16xf32>
    "tpu.trace_start"() <{level = 10 : i32, message = "bij,bjd->bid"}> : () -> ()
    %cst_36 = arith.constant dense<0.000000e+00> : vector<4x8x32xf32>
    %107 = tpu.matmul %106, %49, %cst_36 {dimension_numbers = #tpu.dot_dimension_numbers<[2], [1], [1], [2], [0, 0, 0, 1, 1, 2], [0], [0]>} : vector<4x8x16xf32>, vector<4x16x32xf32>, vector<4x8x32xf32> -> vector<4x8x32xf32>
    "tpu.trace_stop"() : () -> ()
    %108 = vector.shape_cast %107 : vector<4x8x32xf32> to vector<32x32xf32>
    %109 = arith.addf %58, %108 : vector<32x32xf32>
    %cst_37 = arith.constant dense<0.000000e+00> : vector<32xf32>
    %110 = vector.multi_reduction <add>, %109, %cst_37 [1] : vector<32x32xf32> to vector<32xf32>
    %111 = vector.shape_cast %110 : vector<32xf32> to vector<32x1xf32>
    %cst_38 = arith.constant 3.200000e+01 : f32
    %112 = vector.broadcast %cst_38 : f32 to vector<32x1xf32>
    %113 = arith.divf %111, %112 : vector<32x1xf32>
    %114 = vector.broadcast %113 : vector<32x1xf32> to vector<32x32xf32>
    %115 = arith.subf %109, %114 : vector<32x32xf32>
    %116 = arith.mulf %115, %115 : vector<32x32xf32>
    %cst_39 = arith.constant dense<0.000000e+00> : vector<32xf32>
    %117 = vector.multi_reduction <add>, %116, %cst_39 [1] : vector<32x32xf32> to vector<32xf32>
    %118 = vector.shape_cast %117 : vector<32xf32> to vector<32x1xf32>
    %cst_40 = arith.constant 3.200000e+01 : f32
    %119 = vector.broadcast %cst_40 : f32 to vector<32x1xf32>
    %120 = arith.divf %118, %119 : vector<32x1xf32>
    %121 = vector.broadcast %113 : vector<32x1xf32> to vector<32x32xf32>
    %122 = arith.subf %109, %121 : vector<32x32xf32>
    %cst_41 = arith.constant 9.99999974E-6 : f32
    %123 = vector.broadcast %cst_41 : f32 to vector<32x1xf32>
    %124 = arith.addf %120, %123 : vector<32x1xf32>
    %125 = math.rsqrt %124 : vector<32x1xf32>
    %126 = vector.broadcast %125 : vector<32x1xf32> to vector<32x32xf32>
    %127 = arith.mulf %122, %126 : vector<32x32xf32>
    %128 = vector.broadcast %5 : vector<1x32xf32> to vector<32x32xf32>
    %129 = arith.mulf %127, %128 : vector<32x32xf32>
    %130 = vector.broadcast %6 : vector<1x32xf32> to vector<32x32xf32>
    %131 = arith.addf %129, %130 : vector<32x32xf32>
    %cst_42 = arith.constant dense<0.000000e+00> : vector<32x32xf32>
    %132 = tpu.matmul %131, %16, %cst_42 {dimension_numbers = #tpu.dot_dimension_numbers<[1], [0], [0], [1], [0, 0, 1, 1], [], []>} : vector<32x32xf32>, vector<32x32xf32>, vector<32x32xf32> -> vector<32x32xf32>
    %133 = vector.broadcast %10 : vector<1x32xf32> to vector<32x32xf32>
    %134 = arith.addf %132, %133 : vector<32x32xf32>
    %cst_43 = arith.constant 0.000000e+00 : f32
    %135 = vector.broadcast %cst_43 : f32 to vector<32x32xf32>
    %136 = arith.maximumf %134, %135 : vector<32x32xf32>
    %cst_44 = arith.constant dense<0.000000e+00> : vector<32x32xf32>
    %137 = tpu.matmul %136, %18, %cst_44 {dimension_numbers = #tpu.dot_dimension_numbers<[1], [0], [0], [1], [0, 0, 1, 1], [], []>} : vector<32x32xf32>, vector<32x32xf32>, vector<32x32xf32> -> vector<32x32xf32>
    %138 = vector.broadcast %11 : vector<1x32xf32> to vector<32x32xf32>
    %139 = arith.addf %137, %138 : vector<32x32xf32>
    %140 = arith.addf %109, %139 : vector<32x32xf32>
    %cst_45 = arith.constant dense<0.000000e+00> : vector<32xf32>
    %141 = vector.multi_reduction <add>, %140, %cst_45 [1] : vector<32x32xf32> to vector<32xf32>
    %142 = vector.shape_cast %141 : vector<32xf32> to vector<32x1xf32>
    %cst_46 = arith.constant 3.200000e+01 : f32
    %143 = vector.broadcast %cst_46 : f32 to vector<32x1xf32>
    %144 = arith.divf %142, %143 : vector<32x1xf32>
    %145 = vector.broadcast %144 : vector<32x1xf32> to vector<32x32xf32>
    %146 = arith.subf %140, %145 : vector<32x32xf32>
    %147 = arith.mulf %146, %146 : vector<32x32xf32>
    %cst_47 = arith.constant dense<0.000000e+00> : vector<32xf32>
    %148 = vector.multi_reduction <add>, %147, %cst_47 [1] : vector<32x32xf32> to vector<32xf32>
    %149 = vector.shape_cast %148 : vector<32xf32> to vector<32x1xf32>
    %cst_48 = arith.constant 3.200000e+01 : f32
    %150 = vector.broadcast %cst_48 : f32 to vector<32x1xf32>
    %151 = arith.divf %149, %150 : vector<32x1xf32>
    %152 = vector.broadcast %144 : vector<32x1xf32> to vector<32x32xf32>
    %153 = arith.subf %140, %152 : vector<32x32xf32>
    %cst_49 = arith.constant 9.99999974E-6 : f32
    %154 = vector.broadcast %cst_49 : f32 to vector<32x1xf32>
    %155 = arith.addf %151, %154 : vector<32x1xf32>
    %156 = math.rsqrt %155 : vector<32x1xf32>
    %157 = vector.broadcast %156 : vector<32x1xf32> to vector<32x32xf32>
    %158 = arith.mulf %153, %157 : vector<32x32xf32>
    %159 = vector.broadcast %3 : vector<1x32xf32> to vector<32x32xf32>
    %160 = arith.mulf %158, %159 : vector<32x32xf32>
    %161 = vector.broadcast %4 : vector<1x32xf32> to vector<32x32xf32>
    %162 = arith.addf %160, %161 : vector<32x32xf32>
    %cst_50 = arith.constant dense<0.000000e+00> : vector<32x32xf32>
    %163 = tpu.matmul %162, %14, %cst_50 {dimension_numbers = #tpu.dot_dimension_numbers<[1], [0], [0], [1], [0, 0, 1, 1], [], []>} : vector<32x32xf32>, vector<32x32xf32>, vector<32x32xf32> -> vector<32x32xf32>
    %164 = vector.broadcast %9 : vector<1x32xf32> to vector<32x32xf32>
    %165 = arith.addf %163, %164 : vector<32x32xf32>
    %166 = vector.shape_cast %165 : vector<32x32xf32> to vector<4x8x32xf32>
    "tpu.trace_start"() <{level = 10 : i32, message = "bid,bjd->bij"}> : () -> ()
    %cst_51 = arith.constant dense<0.000000e+00> : vector<4x8x16xf32>
    %167 = tpu.matmul %166, %47, %cst_51 {dimension_numbers = #tpu.dot_dimension_numbers<[2], [2], [1], [1], [0, 0, 0, 1, 1, 1], [0], [0]>} : vector<4x8x32xf32>, vector<4x16x32xf32>, vector<4x8x16xf32> -> vector<4x8x16xf32>
    "tpu.trace_stop"() : () -> ()
    %cst_52 = arith.constant 0.176776692 : f32
    %168 = vector.broadcast %cst_52 : f32 to vector<4x8x16xf32>
    %169 = arith.mulf %167, %168 : vector<4x8x16xf32>
    %cst_53 = arith.constant -3.40282347E+38 : f32
    %170 = vector.broadcast %cst_53 : f32 to vector<4x8x16xf32>
    %171 = arith.select %54, %170, %169 : vector<4x8x16xi1>, vector<4x8x16xf32>
    %cst_54 = arith.constant dense<0xFF800000> : vector<4x16xf32>
    %172 = vector.multi_reduction <maximumf>, %171, %cst_54 [1] : vector<4x8x16xf32> to vector<4x16xf32>
    %173 = vector.shape_cast %172 : vector<4x16xf32> to vector<4x1x16xf32>
    %174 = vector.broadcast %173 : vector<4x1x16xf32> to vector<4x8x16xf32>
    %175 = arith.subf %171, %174 : vector<4x8x16xf32>
    %176 = math.exp %175 : vector<4x8x16xf32>
    %cst_55 = arith.constant dense<0.000000e+00> : vector<4x16xf32>
    %177 = vector.multi_reduction <add>, %176, %cst_55 [1] : vector<4x8x16xf32> to vector<4x16xf32>
    %178 = vector.shape_cast %177 : vector<4x16xf32> to vector<4x1x16xf32>
    %179 = tpu.reciprocal %178 {approx = true} : vector<4x1x16xf32> -> vector<4x1x16xf32>
    %180 = vector.broadcast %179 : vector<4x1x16xf32> to vector<4x8x16xf32>
    %181 = arith.mulf %176, %180 : vector<4x8x16xf32>
    %cst_56 = arith.constant dense<0.000000e+00> : vector<4x8xf32>
    %182 = vector.multi_reduction <add>, %181, %cst_56 [2] : vector<4x8x16xf32> to vector<4x8xf32>
    %183 = vector.shape_cast %182 : vector<4x8xf32> to vector<4x8x1xf32>
    %cst_57 = arith.constant 9.99999993E-9 : f32
    %184 = vector.broadcast %cst_57 : f32 to vector<4x8x1xf32>
    %185 = arith.addf %183, %184 : vector<4x8x1xf32>
    %186 = tpu.reciprocal %185 {approx = true} : vector<4x8x1xf32> -> vector<4x8x1xf32>
    %187 = vector.broadcast %186 : vector<4x8x1xf32> to vector<4x8x16xf32>
    %188 = arith.mulf %181, %187 : vector<4x8x16xf32>
    "tpu.trace_start"() <{level = 10 : i32, message = "bij,bjd->bid"}> : () -> ()
    %cst_58 = arith.constant dense<0.000000e+00> : vector<4x8x32xf32>
    %189 = tpu.matmul %188, %49, %cst_58 {dimension_numbers = #tpu.dot_dimension_numbers<[2], [1], [1], [2], [0, 0, 0, 1, 1, 2], [0], [0]>} : vector<4x8x16xf32>, vector<4x16x32xf32>, vector<4x8x32xf32> -> vector<4x8x32xf32>
    "tpu.trace_stop"() : () -> ()
    %190 = vector.shape_cast %189 : vector<4x8x32xf32> to vector<32x32xf32>
    %191 = arith.addf %140, %190 : vector<32x32xf32>
    %cst_59 = arith.constant dense<0.000000e+00> : vector<32xf32>
    %192 = vector.multi_reduction <add>, %191, %cst_59 [1] : vector<32x32xf32> to vector<32xf32>
    %193 = vector.shape_cast %192 : vector<32xf32> to vector<32x1xf32>
    %cst_60 = arith.constant 3.200000e+01 : f32
    %194 = vector.broadcast %cst_60 : f32 to vector<32x1xf32>
    %195 = arith.divf %193, %194 : vector<32x1xf32>
    %196 = vector.broadcast %195 : vector<32x1xf32> to vector<32x32xf32>
    %197 = arith.subf %191, %196 : vector<32x32xf32>
    %198 = arith.mulf %197, %197 : vector<32x32xf32>
    %cst_61 = arith.constant dense<0.000000e+00> : vector<32xf32>
    %199 = vector.multi_reduction <add>, %198, %cst_61 [1] : vector<32x32xf32> to vector<32xf32>
    %200 = vector.shape_cast %199 : vector<32xf32> to vector<32x1xf32>
    %cst_62 = arith.constant 3.200000e+01 : f32
    %201 = vector.broadcast %cst_62 : f32 to vector<32x1xf32>
    %202 = arith.divf %200, %201 : vector<32x1xf32>
    %203 = vector.broadcast %195 : vector<32x1xf32> to vector<32x32xf32>
    %204 = arith.subf %191, %203 : vector<32x32xf32>
    %cst_63 = arith.constant 9.99999974E-6 : f32
    %205 = vector.broadcast %cst_63 : f32 to vector<32x1xf32>
    %206 = arith.addf %202, %205 : vector<32x1xf32>
    %207 = math.rsqrt %206 : vector<32x1xf32>
    %208 = vector.broadcast %207 : vector<32x1xf32> to vector<32x32xf32>
    %209 = arith.mulf %204, %208 : vector<32x32xf32>
    %210 = vector.broadcast %5 : vector<1x32xf32> to vector<32x32xf32>
    %211 = arith.mulf %209, %210 : vector<32x32xf32>
    %212 = vector.broadcast %6 : vector<1x32xf32> to vector<32x32xf32>
    %213 = arith.addf %211, %212 : vector<32x32xf32>
    %cst_64 = arith.constant dense<0.000000e+00> : vector<32x32xf32>
    %214 = tpu.matmul %213, %16, %cst_64 {dimension_numbers = #tpu.dot_dimension_numbers<[1], [0], [0], [1], [0, 0, 1, 1], [], []>} : vector<32x32xf32>, vector<32x32xf32>, vector<32x32xf32> -> vector<32x32xf32>
    %215 = vector.broadcast %10 : vector<1x32xf32> to vector<32x32xf32>
    %216 = arith.addf %214, %215 : vector<32x32xf32>
    %cst_65 = arith.constant 0.000000e+00 : f32
    %217 = vector.broadcast %cst_65 : f32 to vector<32x32xf32>
    %218 = arith.maximumf %216, %217 : vector<32x32xf32>
    %cst_66 = arith.constant dense<0.000000e+00> : vector<32x32xf32>
    %219 = tpu.matmul %218, %18, %cst_66 {dimension_numbers = #tpu.dot_dimension_numbers<[1], [0], [0], [1], [0, 0, 1, 1], [], []>} : vector<32x32xf32>, vector<32x32xf32>, vector<32x32xf32> -> vector<32x32xf32>
    %220 = vector.broadcast %11 : vector<1x32xf32> to vector<32x32xf32>
    %221 = arith.addf %219, %220 : vector<32x32xf32>
    %222 = arith.addf %191, %221 : vector<32x32xf32>
    %cst_67 = arith.constant dense<0.000000e+00> : vector<32xf32>
    %223 = vector.multi_reduction <add>, %222, %cst_67 [1] : vector<32x32xf32> to vector<32xf32>
    %224 = vector.shape_cast %223 : vector<32xf32> to vector<32x1xf32>
    %cst_68 = arith.constant 3.200000e+01 : f32
    %225 = vector.broadcast %cst_68 : f32 to vector<32x1xf32>
    %226 = arith.divf %224, %225 : vector<32x1xf32>
    %227 = vector.broadcast %226 : vector<32x1xf32> to vector<32x32xf32>
    %228 = arith.subf %222, %227 : vector<32x32xf32>
    %229 = arith.mulf %228, %228 : vector<32x32xf32>
    %cst_69 = arith.constant dense<0.000000e+00> : vector<32xf32>
    %230 = vector.multi_reduction <add>, %229, %cst_69 [1] : vector<32x32xf32> to vector<32xf32>
    %231 = vector.shape_cast %230 : vector<32xf32> to vector<32x1xf32>
    %cst_70 = arith.constant 3.200000e+01 : f32
    %232 = vector.broadcast %cst_70 : f32 to vector<32x1xf32>
    %233 = arith.divf %231, %232 : vector<32x1xf32>
    %234 = vector.broadcast %226 : vector<32x1xf32> to vector<32x32xf32>
    %235 = arith.subf %222, %234 : vector<32x32xf32>
    %cst_71 = arith.constant 9.99999974E-6 : f32
    %236 = vector.broadcast %cst_71 : f32 to vector<32x1xf32>
    %237 = arith.addf %233, %236 : vector<32x1xf32>
    %238 = math.rsqrt %237 : vector<32x1xf32>
    %239 = vector.broadcast %238 : vector<32x1xf32> to vector<32x32xf32>
    %240 = arith.mulf %235, %239 : vector<32x32xf32>
    %241 = vector.broadcast %3 : vector<1x32xf32> to vector<32x32xf32>
    %242 = arith.mulf %240, %241 : vector<32x32xf32>
    %243 = vector.broadcast %4 : vector<1x32xf32> to vector<32x32xf32>
    %244 = arith.addf %242, %243 : vector<32x32xf32>
    %cst_72 = arith.constant dense<0.000000e+00> : vector<32x32xf32>
    %245 = tpu.matmul %244, %14, %cst_72 {dimension_numbers = #tpu.dot_dimension_numbers<[1], [0], [0], [1], [0, 0, 1, 1], [], []>} : vector<32x32xf32>, vector<32x32xf32>, vector<32x32xf32> -> vector<32x32xf32>
    %246 = vector.broadcast %9 : vector<1x32xf32> to vector<32x32xf32>
    %247 = arith.addf %245, %246 : vector<32x32xf32>
    %248 = vector.shape_cast %247 : vector<32x32xf32> to vector<4x8x32xf32>
    "tpu.trace_start"() <{level = 10 : i32, message = "bid,bjd->bij"}> : () -> ()
    %cst_73 = arith.constant dense<0.000000e+00> : vector<4x8x16xf32>
    %249 = tpu.matmul %248, %47, %cst_73 {dimension_numbers = #tpu.dot_dimension_numbers<[2], [2], [1], [1], [0, 0, 0, 1, 1, 1], [0], [0]>} : vector<4x8x32xf32>, vector<4x16x32xf32>, vector<4x8x16xf32> -> vector<4x8x16xf32>
    "tpu.trace_stop"() : () -> ()
    %cst_74 = arith.constant 0.176776692 : f32
    %250 = vector.broadcast %cst_74 : f32 to vector<4x8x16xf32>
    %251 = arith.mulf %249, %250 : vector<4x8x16xf32>
    %cst_75 = arith.constant -3.40282347E+38 : f32
    %252 = vector.broadcast %cst_75 : f32 to vector<4x8x16xf32>
    %253 = arith.select %54, %252, %251 : vector<4x8x16xi1>, vector<4x8x16xf32>
    %cst_76 = arith.constant dense<0xFF800000> : vector<4x16xf32>
    %254 = vector.multi_reduction <maximumf>, %253, %cst_76 [1] : vector<4x8x16xf32> to vector<4x16xf32>
    %255 = vector.shape_cast %254 : vector<4x16xf32> to vector<4x1x16xf32>
    %256 = vector.broadcast %255 : vector<4x1x16xf32> to vector<4x8x16xf32>
    %257 = arith.subf %253, %256 : vector<4x8x16xf32>
    %258 = math.exp %257 : vector<4x8x16xf32>
    %cst_77 = arith.constant dense<0.000000e+00> : vector<4x16xf32>
    %259 = vector.multi_reduction <add>, %258, %cst_77 [1] : vector<4x8x16xf32> to vector<4x16xf32>
    %260 = vector.shape_cast %259 : vector<4x16xf32> to vector<4x1x16xf32>
    %261 = tpu.reciprocal %260 {approx = true} : vector<4x1x16xf32> -> vector<4x1x16xf32>
    %262 = vector.broadcast %261 : vector<4x1x16xf32> to vector<4x8x16xf32>
    %263 = arith.mulf %258, %262 : vector<4x8x16xf32>
    %cst_78 = arith.constant dense<0.000000e+00> : vector<4x8xf32>
    %264 = vector.multi_reduction <add>, %263, %cst_78 [2] : vector<4x8x16xf32> to vector<4x8xf32>
    %265 = vector.shape_cast %264 : vector<4x8xf32> to vector<4x8x1xf32>
    %cst_79 = arith.constant 9.99999993E-9 : f32
    %266 = vector.broadcast %cst_79 : f32 to vector<4x8x1xf32>
    %267 = arith.addf %265, %266 : vector<4x8x1xf32>
    %268 = tpu.reciprocal %267 {approx = true} : vector<4x8x1xf32> -> vector<4x8x1xf32>
    %269 = vector.broadcast %268 : vector<4x8x1xf32> to vector<4x8x16xf32>
    %270 = arith.mulf %263, %269 : vector<4x8x16xf32>
    "tpu.trace_start"() <{level = 10 : i32, message = "bij,bjd->bid"}> : () -> ()
    %cst_80 = arith.constant dense<0.000000e+00> : vector<4x8x32xf32>
    %271 = tpu.matmul %270, %49, %cst_80 {dimension_numbers = #tpu.dot_dimension_numbers<[2], [1], [1], [2], [0, 0, 0, 1, 1, 2], [0], [0]>} : vector<4x8x16xf32>, vector<4x16x32xf32>, vector<4x8x32xf32> -> vector<4x8x32xf32>
    "tpu.trace_stop"() : () -> ()
    %272 = vector.shape_cast %271 : vector<4x8x32xf32> to vector<32x32xf32>
    %273 = arith.addf %222, %272 : vector<32x32xf32>
    %cst_81 = arith.constant dense<0.000000e+00> : vector<32xf32>
    %274 = vector.multi_reduction <add>, %273, %cst_81 [1] : vector<32x32xf32> to vector<32xf32>
    %275 = vector.shape_cast %274 : vector<32xf32> to vector<32x1xf32>
    %cst_82 = arith.constant 3.200000e+01 : f32
    %276 = vector.broadcast %cst_82 : f32 to vector<32x1xf32>
    %277 = arith.divf %275, %276 : vector<32x1xf32>
    %278 = vector.broadcast %277 : vector<32x1xf32> to vector<32x32xf32>
    %279 = arith.subf %273, %278 : vector<32x32xf32>
    %280 = arith.mulf %279, %279 : vector<32x32xf32>
    %cst_83 = arith.constant dense<0.000000e+00> : vector<32xf32>
    %281 = vector.multi_reduction <add>, %280, %cst_83 [1] : vector<32x32xf32> to vector<32xf32>
    %282 = vector.shape_cast %281 : vector<32xf32> to vector<32x1xf32>
    %cst_84 = arith.constant 3.200000e+01 : f32
    %283 = vector.broadcast %cst_84 : f32 to vector<32x1xf32>
    %284 = arith.divf %282, %283 : vector<32x1xf32>
    %285 = vector.broadcast %277 : vector<32x1xf32> to vector<32x32xf32>
    %286 = arith.subf %273, %285 : vector<32x32xf32>
    %cst_85 = arith.constant 9.99999974E-6 : f32
    %287 = vector.broadcast %cst_85 : f32 to vector<32x1xf32>
    %288 = arith.addf %284, %287 : vector<32x1xf32>
    %289 = math.rsqrt %288 : vector<32x1xf32>
    %290 = vector.broadcast %289 : vector<32x1xf32> to vector<32x32xf32>
    %291 = arith.mulf %286, %290 : vector<32x32xf32>
    %292 = vector.broadcast %5 : vector<1x32xf32> to vector<32x32xf32>
    %293 = arith.mulf %291, %292 : vector<32x32xf32>
    %294 = vector.broadcast %6 : vector<1x32xf32> to vector<32x32xf32>
    %295 = arith.addf %293, %294 : vector<32x32xf32>
    %cst_86 = arith.constant dense<0.000000e+00> : vector<32x32xf32>
    %296 = tpu.matmul %295, %16, %cst_86 {dimension_numbers = #tpu.dot_dimension_numbers<[1], [0], [0], [1], [0, 0, 1, 1], [], []>} : vector<32x32xf32>, vector<32x32xf32>, vector<32x32xf32> -> vector<32x32xf32>
    %297 = vector.broadcast %10 : vector<1x32xf32> to vector<32x32xf32>
    %298 = arith.addf %296, %297 : vector<32x32xf32>
    %cst_87 = arith.constant 0.000000e+00 : f32
    %299 = vector.broadcast %cst_87 : f32 to vector<32x32xf32>
    %300 = arith.maximumf %298, %299 : vector<32x32xf32>
    %cst_88 = arith.constant dense<0.000000e+00> : vector<32x32xf32>
    %301 = tpu.matmul %300, %18, %cst_88 {dimension_numbers = #tpu.dot_dimension_numbers<[1], [0], [0], [1], [0, 0, 1, 1], [], []>} : vector<32x32xf32>, vector<32x32xf32>, vector<32x32xf32> -> vector<32x32xf32>
    %302 = vector.broadcast %11 : vector<1x32xf32> to vector<32x32xf32>
    %303 = arith.addf %301, %302 : vector<32x32xf32>
    %304 = arith.addf %273, %303 : vector<32x32xf32>
    %cst_89 = arith.constant dense<0.000000e+00> : vector<32xf32>
    %305 = vector.multi_reduction <add>, %304, %cst_89 [1] : vector<32x32xf32> to vector<32xf32>
    %306 = vector.shape_cast %305 : vector<32xf32> to vector<32x1xf32>
    %cst_90 = arith.constant 3.200000e+01 : f32
    %307 = vector.broadcast %cst_90 : f32 to vector<32x1xf32>
    %308 = arith.divf %306, %307 : vector<32x1xf32>
    %309 = vector.broadcast %308 : vector<32x1xf32> to vector<32x32xf32>
    %310 = arith.subf %304, %309 : vector<32x32xf32>
    %311 = arith.mulf %310, %310 : vector<32x32xf32>
    %cst_91 = arith.constant dense<0.000000e+00> : vector<32xf32>
    %312 = vector.multi_reduction <add>, %311, %cst_91 [1] : vector<32x32xf32> to vector<32xf32>
    %313 = vector.shape_cast %312 : vector<32xf32> to vector<32x1xf32>
    %cst_92 = arith.constant 3.200000e+01 : f32
    %314 = vector.broadcast %cst_92 : f32 to vector<32x1xf32>
    %315 = arith.divf %313, %314 : vector<32x1xf32>
    %316 = vector.broadcast %308 : vector<32x1xf32> to vector<32x32xf32>
    %317 = arith.subf %304, %316 : vector<32x32xf32>
    %cst_93 = arith.constant 9.99999974E-6 : f32
    %318 = vector.broadcast %cst_93 : f32 to vector<32x1xf32>
    %319 = arith.addf %315, %318 : vector<32x1xf32>
    %320 = math.rsqrt %319 : vector<32x1xf32>
    %321 = vector.broadcast %320 : vector<32x1xf32> to vector<32x32xf32>
    %322 = arith.mulf %317, %321 : vector<32x32xf32>
    %323 = vector.broadcast %7 : vector<1x32xf32> to vector<32x32xf32>
    %324 = arith.mulf %322, %323 : vector<32x32xf32>
    %325 = vector.broadcast %8 : vector<1x32xf32> to vector<32x32xf32>
    %326 = arith.addf %324, %325 : vector<32x32xf32>
    %327 = vector.shape_cast %326 : vector<32x32xf32> to vector<4x8x32xf32>
    %c0_94 = arith.constant 0 : index
    %c0_95 = arith.constant 0 : index
    %c0_96 = arith.constant 0 : index
    %328 = vector.load %arg7[%c0_94, %c0_95, %c0_96] : memref<4x8x32xf32, #tpu.memory_space<vmem>>, vector<4x8x32xf32>
    tpu.vector_store %arg7[%c0_94, %c0_95, %c0_96], %327 {strides = array<i32>} : memref<4x8x32xf32, #tpu.memory_space<vmem>>, vector<4x8x32xf32>,
    return
  }
  func.func @transform_0(%arg0: i32) -> (i32, i32) {
    %c0_i32 = arith.constant 0 : i32
    %c0_i32_0 = arith.constant 0 : i32
    return %arg0, %c0_i32 : i32, i32
  }
  func.func @transform_1(%arg0: i32) -> (i32, i32, i32) {
    %c0_i32 = arith.constant 0 : i32
    %c0_i32_0 = arith.constant 0 : i32
    %c0_i32_1 = arith.constant 0 : i32
    return %arg0, %c0_i32, %c0_i32_0 : i32, i32, i32
  }
  func.func @transform_2(%arg0: i32) -> (i32, i32) {
    %c0_i32 = arith.constant 0 : i32
    %c0_i32_0 = arith.constant 0 : i32
    %c0_i32_1 = arith.constant 0 : i32
    return %c0_i32, %c0_i32_0 : i32, i32
  }
  func.func @transform_3(%arg0: i32) -> (i32, i32) {
    %c0_i32 = arith.constant 0 : i32
    %c0_i32_0 = arith.constant 0 : i32
    %c0_i32_1 = arith.constant 0 : i32
    return %c0_i32, %c0_i32_0 : i32, i32
  }
  func.func @transform_4(%arg0: i32) -> (i32, i32, i32) {
    %c0_i32 = arith.constant 0 : i32
    %c0_i32_0 = arith.constant 0 : i32
    %c0_i32_1 = arith.constant 0 : i32
    %c0_i32_2 = arith.constant 0 : i32
    return %c0_i32, %c0_i32_0, %c0_i32_1 : i32, i32, i32
  }
  func.func @transform_5(%arg0: i32) -> (i32, i32) {
    %c0_i32 = arith.constant 0 : i32
    %c0_i32_0 = arith.constant 0 : i32
    %c0_i32_1 = arith.constant 0 : i32
    return %c0_i32, %c0_i32_0 : i32, i32
  }
  func.func @transform_6(%arg0: i32) -> (i32, i32, i32) {
    %c0_i32 = arith.constant 0 : i32
    %c0_i32_0 = arith.constant 0 : i32
    %c0_i32_1 = arith.constant 0 : i32
    return %arg0, %c0_i32, %c0_i32_0 : i32, i32, i32
  }
}

</mosaic_0001>

<bundles_post_ra>
// kernel: tpu_custom_call.1
= control target key start
LH: loop header
LB: loop body
LE: loop exit
PB: predicated region body
PF: predicated region fallthrough
CT: control target
= control target key end

     0   :  { %11 = vsyncpa [#allocation3], 0  ;;  %s6088_s0 = inlined_call_operand.vmem [shape: f32[128,32], index: 0, kind: input, shape index: {}]   ;;  %s6089_s1 = inlined_call_operand.vmem [shape: f32[8,1,16], index: 1, kind: input, shape index: {}]   ;;  %s6090_s2 = inlined_call_operand.vmem [shape: f32[8,32], index: 2, kind: input, shape index: {}]   ;;  %s6091_s3 = inlined_call_operand.vmem [shape: f32[32,64], index: 3, kind: input, shape index: {}]   ;;  %s6092_s4 = inlined_call_operand.vmem [shape: f32[3,32,32], index: 4, kind: input, shape index: {}]   ;;  %s6093_s5 = inlined_call_operand.vmem [shape: f32[16,64], index: 5, kind: input, shape index: {}]   ;;  %s6094_s6 = inlined_call_operand.hbm [shape: f32[8,8,32], index: 6, kind: output, shape index: {}]  }
   0x1   :  { %13 = vsyncpa [#allocation3 + $0x1], 0  ;;  %s5183_s21 = smov 0   ;;  %s5185_s22 = smov 0  }
   0x2   :  { %s5187_s23 = smov 0   ;;  %s5189_s24 = smov 0  }
   0x3 LB: > { %s5204_s25 = sadd.s32 4294967295, %s5139_s24   ;;  %s4121_s26 = sadd.s32 4294967294, %s5139_s24   ;;  %s5139_s24 = sphi %s5189_s24, %s6102_s24   ;;  %s5135_s23 = sphi %s5187_s23, %s6101_s23   ;;  %s5131_s22 = sphi %s5185_s22, %s6100_s22   ;;  %s5127_s21 = sphi %s5183_s21, %s6099_s21  }
   0x4   : > { %s5208_s27 = sadd.s32 1, %s5139_s24   ;;  %s162_s28 = sadd.s32 1, %s5135_s23 }
   0x5   : > { %s159_s29 = ssub.s32 %s5139_s24, %s5208_s27  ;;  %p172_p0 = scmp.ne.s32.totalorder %s5135_s23, %s5131_s22 }
   0x6   : > { %p160_p1 = scmp.eq.s32.totalorder %s159_s29, 0  ;;  %p173_p2 = scmp.eq.s32.totalorder %s5204_s25, 1 }
   0x7   : > { %p178_p3 = scmp.ne.s32.totalorder %s5131_s22, %s5127_s21  ;;  %p179_p4 = scmp.eq.s32.totalorder %s4121_s26, 1 }
   0x8   : > { %s5219_s30 = scalar_select %p160_p1, %s5135_s23, %s162_s28  }
   0x9   : > { %p5221_p5 = por %p173_p2, %p172_p0  ;;  %p5225_p6 = por %p179_p4, %p178_p3 }
   0xa   : > { %p4124_p7 = scmp.ge.s32.totalorder %s5139_s24, 1  ;;  %p226_p8 = scmp.lt.s32.totalorder %s5139_s24, 3 }
   0xc   : > { %p227_p9 = pnand %p4124_p7, %p226_p8 }
   0xd   : > { %s4126_s9 = sshll.u32 (!%p227_p9), %s5204_s25, 3  ;;  %vm296_vm0 = vcmask (!%p227_p9), 261120   ;;  %v5242_v8 = vld [vmem:[%s6090_s2] sm:$0xff] (!%p227_p9)  ;;  %vm5142_vm1 = vmmov (!%p227_p9), 0   ;;  %s4128_s26 = sshll.u32 (!%p227_p9), %s5204_s25, 2  ;;  %vm1035_vm4 = vcmask (!%p227_p9), 130048  }
   0xe   : > { %230 = sbr.rel (%p227_p9) target bundleno = 6183 (0x1827), region = 44  ;;  %p261_p10 = scmp.lt.s32.totalorder (!%p227_p9), %s4126_s9, 15  ;;  %v596_v10 = vsel (!%p227_p9), %vm296_vm0, %v5242_v8, 0.0  ;;  %v426_v63 = vld [vmem:[%s6091_s3] sm:$0xff] (!%p227_p9)  ;;  %vm5394_vm2 = vmpackc.low (!%p227_p9), %vm296_vm0, %vm296_vm0 }
   0xf   : > { %p267_p11 = scmp.lt.s32.totalorder (!%p227_p9), %s4128_s26, 7  ;;  %s257_s12 = sand.u32 (!%p227_p9), 1, %s5131_s22  }
  0x10   : > { %s4125_s15 = sshll.u32 (!%p227_p9), %s257_s12, 5  ;;  %s4238_s17 = sshll.u32 (!%p227_p9), %s5204_s25, 9 }
  0x11   : > { %s259_s16 = scalar_lea.vmem (!%p227_p9), [#allocation2], %s4125_s15  ;;  %s6047_s25 = scalar_lea.sflag (!%p227_p9), [#allocation3], %s257_s12 }
  0x12   : > { %s4050_s18 = sshll.u32 (!%p227_p9), %s259_s16, 4  ;;  %s5145_s29 = smov (!%p227_p9), [#allocation2]   ;;  %s6041_s18 = int_to_ptr.vmem [resolvable:$true] %s4050_s18 }
  0x13   : > { %s5077_s28 = scalar_lea.vmem (!%p227_p9), %s6041_s18, 512 }
  0x14   : > { %p5078_p12 = scmp.ne.s32.totalorder (!%p227_p9), %s6041_s18, %s5077_s28 }
  0x15   : > { %s6104_s9 = smov (!%p261_p10, %s4126_s9), 15  ;;  %s6106_s26 = smov (!%p267_p11, %s4128_s26), 7 }
  0x16   : > { %s4127_s10 = sshll.u32 %s6104_s9, 3  ;;  %s5475_s9 = scalar_lea.vmem %s6089_s1, %s6106_s26 }
  0x17   : > { %s264_s13 = scalar_lea.vmem %s6088_s0, %s4127_s10  ;;  %s5144_s10 = smov 96  }
  0x18   : > { %v288_v0 = vld [vmem:[%s264_s13] sm:$0xff]  ;;  %v290_v1 = vld [vmem:[%s264_s13 + $0x10] sm:$0xff]  ;;  %v289_v2 = vld [vmem:[%s264_s13 + $0x8] sm:$0xff]  ;;  %s6039_s26 = scalar_lea.hbm %s6094_s6, %s4238_s17  ;;  %p5079_p13 = pnand %p5078_p12, %p5221_p5 }
  0x19   : > { %v297_v3 = vsel %vm296_vm0, %v288_v0, 0.0  ;;  %v303_v4 = vsel %vm296_vm0, %v290_v1, 0.0  ;;  %v291_v5 = vld [vmem:[%s264_s13 + $0x18] sm:$0xff]  ;;  %v300_v6 = vsel %vm296_vm0, %v289_v2, 0.0  ;;  %v292_v9 = vld [vmem:[%s264_s13 + $0x20] sm:$0xff]  ;;  %v293_v12 = vld [vmem:[%s264_s13 + $0x28] sm:$0xff] }
  0x1a   : > { %298 = vadd.xlane.f32.xlu0 %v297_v3  ;;  %304 = vadd.xlane.f32.xlu1 %v303_v4  ;;  %v306_v7 = vsel %vm296_vm0, %v291_v5, 0.0  ;;  %v309_v11 = vsel %vm296_vm0, %v292_v9, 0.0  ;;  %v294_v13 = vld [vmem:[%s264_s13 + $0x30] sm:$0xff]  ;;  %v312_v14 = vsel %vm296_vm0, %v293_v12, 0.0  ;;  %v295_v16 = vld [vmem:[%s264_s13 + $0x38] sm:$0xff]  ;;  %p5080_p0 = pneg %p5079_p13 }
  0x1b   : > { %v315_v15 = vsel %vm296_vm0, %v294_v13, 0.0  ;;  %v318_v17 = vsel %vm296_vm0, %v295_v16, 0.0  ;;  %v429_v3 = vld [vmem:[%s6091_s3 + $0x18] sm:$0xff] }
  0x1e   : > { %301 = vadd.xlane.f32.xlu0 %v300_v6  ;;  %307 = vadd.xlane.f32.xlu1 %v306_v7  ;;  %v275_v6 = vld [vmem:[%s6092_s4 + $0x8] sm:$0xff] }
  0x22   : > { %597 = vadd.xlane.f32.xlu0 %v596_v10  ;;  %310 = vadd.xlane.f32.xlu1 %v309_v11  ;;  %v277_v10 = vld [vmem:[%s6092_s4 + $0x18] sm:$0xff] }
  0x26   : > { %313 = vadd.xlane.f32.xlu0 %v312_v14  ;;  %316 = vadd.xlane.f32.xlu1 %v315_v15  ;;  %v402_v14 = vlaneseq }
  0x2a   : > { %319 = vadd.xlane.f32.xlu0 %v318_v17 }
  0xa7   : > { %v299_v18 = vpop.xlane.xlu0 %298  ;;  %v305_v19 = vpop.xlane.xlu1 %304 }
  0xa8   : > { %v322_v20 = vmul.f32 0.03125, %v299_v18  ;;  %v324_v21 = vmul.f32 0.03125, %v305_v19 }
  0xaa   : > { %v5250_v22 = vsub.f32 %v288_v0, %v322_v20  ;;  %v5252_v23 = vsub.f32 %v290_v1, %v324_v21  ;;  %v427_v0 = vld [vmem:[%s6091_s3 + $0x8] sm:$0xff]  ;;  %v5328_v20 = vshrl.u32 %v402_v14, 7 }
  0xab   : > { %v302_v24 = vpop.xlane.xlu0 %301  ;;  %v308_v25 = vpop.xlane.xlu1 %307  ;;  %v4709_v1 = vpack.c.bf16 %v427_v0, %v426_v63 }
  0xac   : > { %v323_v26 = vmul.f32 0.03125, %v302_v24  ;;  %v325_v27 = vmul.f32 0.03125, %v308_v25  ;;  %v338_v28 = vmul.f32 %v5250_v22, %v5250_v22  ;;  %v340_v29 = vmul.f32 %v5252_v23, %v5252_v23 }
  0xad   : > { %4710 = vmatprep.subr.bf16.mxu0 %v4709_v1 }
  0xae   : > { %v5258_v30 = vsub.f32 %v289_v2, %v323_v26  ;;  %v5260_v31 = vsub.f32 %v291_v5, %v325_v27  ;;  %v346_v32 = vsel %vm296_vm0, %v338_v28, 0.0  ;;  %v352_v35 = vsel %vm296_vm0, %v340_v29, 0.0  ;;  %4712 = vmatpush3.bf16.msra.mxu0 %v4709_v1  ;;  %v428_v2 = vld [vmem:[%s6091_s3 + $0x10] sm:$0xff]  ;;  %v274_v5 = vld [vmem:[%s6092_s4] sm:$0xff] }
  0xaf   : > { %347 = vadd.xlane.f32.xlu1 %v346_v32  ;;  %v598_v33 = vpop.xlane.xlu0 %597  ;;  %v311_v34 = vpop.xlane.xlu1 %310  ;;  %v4713_v4 = vpack.c.bf16 %v429_v3, %v428_v2  ;;  %v5314_v7 = vpack.c.bf16 %v275_v6, %v274_v5  ;;  %v404_v29 = vsub.s32 0, %v5328_v20 }
  0xb0   : > { %v599_v36 = vmul.f32 0.03125, %v598_v33  ;;  %v326_v37 = vmul.f32 0.03125, %v311_v34  ;;  %v339_v38 = vmul.f32 %v5258_v30, %v5258_v30  ;;  %v341_v39 = vmul.f32 %v5260_v31, %v5260_v31  ;;  %v5334_v34 = vld [vmem:[%s6093_s5] sm:$0xff] }
  0xb1   : > { %4714 = vmatprep.subr.bf16.mxu0 %v4713_v4  ;;  %4718 = vmatprep.subr.bf16.mxu1 %v5314_v7 }
  0xb2   : > { %v5269_v40 = vsub.f32 %v5242_v8, %v599_v36  ;;  %v5271_v41 = vsub.f32 %v292_v9, %v326_v37  ;;  %v349_v42 = vsel %vm296_vm0, %v339_v38, 0.0  ;;  %v355_v45 = vsel %vm296_vm0, %v341_v39, 0.0  ;;  %4716 = vmatpush3.bf16.msra.mxu0 %v4713_v4  ;;  %4720 = vmatpush3.bf16.msra.mxu1 %v5314_v7  ;;  %v276_v9 = vld [vmem:[%s6092_s4 + $0x10] sm:$0xff] }
  0xb3   : > { %353 = vadd.xlane.f32.xlu1 %v352_v35  ;;  %350 = vadd.xlane.f32.xlu0 %v349_v42  ;;  %v314_v43 = vpop.xlane.xlu0 %313  ;;  %v317_v44 = vpop.xlane.xlu1 %316  ;;  %v5324_v11 = vpack.c.bf16 %v277_v10, %v276_v9  ;;  %v416_v37 = vsub.s32 1, %v5328_v20  ;;  %v405_v42 = vrot.slane %v5334_v34, %v404_v29 }
  0xb4   : > { %v327_v46 = vmul.f32 0.03125, %v314_v43  ;;  %v328_v47 = vmul.f32 0.03125, %v317_v44  ;;  %v601_v48 = vmul.f32 %v5269_v40, %v5269_v40  ;;  %v342_v49 = vmul.f32 %v5271_v41, %v5271_v41 }
  0xb5   : > { %4722 = vmatprep.subr.bf16.mxu1 %v5324_v11 }
  0xb6   : > { %v5279_v50 = vsub.f32 %v293_v12, %v327_v46  ;;  %v5281_v51 = vsub.f32 %v294_v13, %v328_v47  ;;  %v602_v52 = vsel %vm296_vm0, %v601_v48, 0.0  ;;  %v358_v55 = vsel %vm296_vm0, %v342_v49, 0.0  ;;  %4724 = vmatpush3.bf16.msra.mxu1 %v5324_v11 }
  0xb7   : > { %356 = vadd.xlane.f32.xlu0 %v355_v45  ;;  %603 = vadd.xlane.f32.xlu1 %v602_v52  ;;  %v320_v53 = vpop.xlane.xlu0 %319  ;;  %v417_v49 = vrot.slane %v5334_v34, %v416_v37 }
  0xb8   : > { %v329_v54 = vmul.f32 0.03125, %v320_v53  ;;  %v343_v56 = vmul.f32 %v5279_v50, %v5279_v50  ;;  %v344_v57 = vmul.f32 %v5281_v51, %v5281_v51 }
  0xba   : > { %v5289_v58 = vsub.f32 %v295_v16, %v329_v54  ;;  %v361_v59 = vsel %vm296_vm0, %v343_v56, 0.0  ;;  %v364_v60 = vsel %vm296_vm0, %v344_v57, 0.0 }
  0xbb   : > { %359 = vadd.xlane.f32.xlu0 %v358_v55  ;;  %362 = vadd.xlane.f32.xlu1 %v361_v59  ;;  %v611_v55 = vsub.s32 2, %v5328_v20 }
  0xbc   : > { %v345_v61 = vmul.f32 %v5289_v58, %v5289_v58 }
  0xbd   : > { %v5352_v1 = vrot.slane %v5334_v34, %v611_v55 }
  0xbe   : > { %v367_v62 = vsel %vm296_vm0, %v345_v61, 0.0 }
  0xbf   : > { %365 = vadd.xlane.f32.xlu0 %v364_v60  ;;  %368 = vadd.xlane.f32.xlu1 %v367_v62 }
 0x13c   : > { %v348_v12 = vpop.xlane.xlu1 %347 }
 0x13d   : > { %v370_v13 = vmul.f32 0.03125, %v348_v12 }
 0x13f   : > { %v378_v15 = vadd.f32 1e-05, %v370_v13 }
 0x140   : > { %v354_v16 = vpop.xlane.xlu1 %353  ;;  %v351_v17 = vpop.xlane.xlu0 %350 }
 0x141   : > { %4938 = vrsqrt.f32 %v378_v15  ;;  %v372_v18 = vmul.f32 0.03125, %v354_v16  ;;  %v371_v19 = vmul.f32 0.03125, %v351_v17 }
 0x143   : > { %v380_v21 = vadd.f32 1e-05, %v372_v18  ;;  %v379_v24 = vadd.f32 1e-05, %v371_v19 }
 0x144   : > { %v604_v25 = vpop.xlane.xlu1 %603  ;;  %v357_v26 = vpop.xlane.xlu0 %356 }
 0x145   : > { %4940 = vrsqrt.f32 %v380_v21  ;;  %v605_v27 = vmul.f32 0.03125, %v604_v25  ;;  %v373_v28 = vmul.f32 0.03125, %v357_v26 }
 0x146   : > { %4942 = vrsqrt.f32 %v379_v24 }
 0x147   : > { %v606_v32 = vadd.f32 1e-05, %v605_v27  ;;  %v381_v33 = vadd.f32 1e-05, %v373_v28 }
 0x148   : > { %v363_v35 = vpop.xlane.xlu1 %362  ;;  %v360_v36 = vpop.xlane.xlu0 %359 }
 0x149   : > { %4944 = vrsqrt.f32 %v606_v32  ;;  %v375_v38 = vmul.f32 0.03125, %v363_v35  ;;  %v374_v39 = vmul.f32 0.03125, %v360_v36 }
 0x14a   : > { %4946 = vrsqrt.f32 %v381_v33  ;;  %v5141_v33 = vmov 0.0|0.0  }
 0x14b   : > { %v4939_v43 = vpop.eup %4938  ;;  %v383_v44 = vadd.f32 1e-05, %v375_v38  ;;  %v382_v45 = vadd.f32 1e-05, %v374_v39  ;;  %4725 = vmatprep.subr.bf16.mxu1 %v5141_v33  ;;  %4729 = vmatprep.subr.bf16.mxu0 %v5141_v33 }
 0x14c   : > { %v369_v46 = vpop.xlane.xlu1 %368  ;;  %v366_v47 = vpop.xlane.xlu0 %365  ;;  %v394_v48 = vmul.f32 %v4939_v43, %v5250_v22  ;;  %v432_v22 = vsub.s32 3, %v5328_v20 }
 0x14d   : > { %4948 = vrsqrt.f32 %v383_v44  ;;  %v377_v52 = vmul.f32 0.03125, %v369_v46  ;;  %v376_v53 = vmul.f32 0.03125, %v366_v47 }
 0x14e   : > { %4950 = vrsqrt.f32 %v382_v45  ;;  %v406_v54 = vmul.f32 %v405_v42, %v394_v48  ;;  %v5356_v6 = vrot.slane %v5334_v34, %v432_v22 }
 0x14f   : > { %v4941_v56 = vpop.eup %4940  ;;  %v385_v57 = vadd.f32 1e-05, %v377_v52  ;;  %v384_v59 = vadd.f32 1e-05, %v376_v53 }
 0x150   : > { %v4943_v60 = vpop.eup %4942  ;;  %v418_v61 = vadd.f32 %v417_v49, %v406_v54  ;;  %v396_v62 = vmul.f32 %v4941_v56, %v5252_v23 }
 0x151   : > { %4952 = vrsqrt.f32 %v385_v57  ;;  %v395_v63 = vmul.f32 %v4943_v60, %v5258_v30 }
 0x152   : > { %4954 = vrsqrt.f32 %v384_v59  ;;  %4403 = vmatprep.mubr.msk.f32.mxu0 %vm296_vm0, %v418_v61  ;;  %v408_v0 = vmul.f32 %v405_v42, %v396_v62 }
 0x153   : > { %v4945_v2 = vpop.eup %4944  ;;  %v407_v3 = vmul.f32 %v405_v42, %v395_v63 }
 0x154   : > { %v4947_v4 = vpop.eup %4946  ;;  %v420_v5 = vadd.f32 %v417_v49, %v408_v0  ;;  %v608_v23 = vmul.f32 %v4945_v2, %v5269_v40 }
 0x155   : > { %v419_v9 = vadd.f32 %v417_v49, %v407_v3  ;;  %v397_v30 = vmul.f32 %v4947_v4, %v5260_v31 }
 0x156   : > { %v613_v10 = vmul.f32 %v5352_v1, %v608_v23 }
 0x157   : > { %v4949_v12 = vpop.eup %4948  ;;  %4404 = vmatmul.mubr.msk.f32.vlgmr.msra.gmra.mrb[0].mxu0 %vm296_vm0, %v419_v9  ;;  %v409_v13 = vmul.f32 %v405_v42, %v397_v30 }
 0x158   : > { %v4951_v14 = vpop.eup %4950  ;;  %4406 = vmatprep.mubr.msk.f32.mxu0 %vm296_vm0, %v420_v5  ;;  %v618_v15 = vadd.f32 %v5356_v6, %v613_v10  ;;  %v399_v16 = vmul.f32 %v4949_v12, %v5279_v50 }
 0x159   : > { %v421_v40 = vadd.f32 %v417_v49, %v409_v13  ;;  %v398_v17 = vmul.f32 %v4951_v14, %v5271_v41  ;;  %v5478_v14 = vld [vmem:[%s5475_s9] ss:$0 sm:$0xff] }
 0x15a   : > { %4423 = vmatprep.mubr.msk.f32.mxu1 %vm296_vm0, %v618_v15  ;;  %v411_v18 = vmul.f32 %v405_v42, %v399_v16  ;;  %vm591_vm3 = vcmp.gt.f32.partialorder %v5478_v14, 0.5 }
 0x15b   : > { %v4953_v31 = vpop.eup %4952  ;;  %4407 = vmatmul.mubr.msk.f32.gmra.mrb[2].mxu0 %vm296_vm0, %v421_v40  ;;  %4424 = vmatmul.mubr.msk.f32.vlgmr.msra.gmra.mrb[0].mxu1 %vm296_vm0, %v618_v15  ;;  %v410_v19 = vmul.f32 %v405_v42, %v398_v17  ;;  %v5482_v17 = vld [vmem:[%s5475_s9 + $0x1] ss:$0 sm:$0xff] }
 0x15c   : > { %v4955_v21 = vpop.eup %4954  ;;  %4426 = vmatprep.mubr.msk.f32.mxu1 %vm296_vm0, %v618_v15  ;;  %v423_v24 = vadd.f32 %v417_v49, %v411_v18  ;;  %v401_v25 = vmul.f32 %v4953_v31, %v5289_v58  ;;  %v5385_v58 = vld [vmem:[%s6093_s5 + $0x8] sm:$0xff]  ;;  %vm592_vm5 = vcmp.gt.f32.partialorder %v5482_v17, 0.5 }
 0x15d   : > { %v422_v26 = vadd.f32 %v417_v49, %v410_v19  ;;  %v400_v50 = vmul.f32 %v4955_v21, %v5281_v51  ;;  %v5143_v51 = vmov 0.0   ;;  %v433_v35 = vrot.slane %v5385_v58, %v432_v22 }
 0x15e   : > { %v413_v27 = vmul.f32 %v405_v42, %v401_v25  ;;  %v5414_v54 = vrot.slane %v5385_v58, %v404_v29 }
 0x15f   : > { %4409 = vmatprep.mubr.msk.f32.mxu0 %vm296_vm0, %v422_v26  ;;  %4427 = vmatmul.mubr.msk.f32.gmra.mrb[2].mxu1 %vm296_vm0, %v618_v15  ;;  %v412_v41 = vmul.f32 %v405_v42, %v400_v50  ;;  %v5489_v26 = vld [vmem:[%s5475_s9 + $0x2] ss:$0 sm:$0xff] }
 0x160   : > { %4410 = vmatmul.mubr.msk.f32.gmra.mrb[4].mxu0 %vm296_vm0, %v423_v24  ;;  %v425_v28 = vadd.f32 %v417_v49, %v413_v27  ;;  %4433 = vmatprep.mubr.msk.f32.mxu1 %vm5142_vm1, %v5143_v51  ;;  %vm593_vm6 = vcmp.gt.f32.partialorder %v5489_v26, 0.5 }
 0x161   : > { %v424_v32 = vadd.f32 %v417_v49, %v412_v41 }
 0x163   : > { %4412 = vmatprep.mubr.msk.f32.mxu0 %vm296_vm0, %v424_v32 }
 0x164   : > { %4413 = vmatmul.mubr.msk.f32.gmra.mrb[6].mxu0 %vm296_vm0, %v425_v28 }
 0x165   : > { %4440 = vmatprep.mubr.msk.f32.mxu0 %vm5142_vm1, %v5143_v51 }
 0x22a   : > { %v4405_v36 = vpop.f32.mrb[0].mxu0 }
 0x22b   : > { %v5388_v38 = vadd.f32 %v4405_v36, %v433_v35  ;;  %v524_v39 = vpop.f32.mrb[1].mxu0 }
 0x22c   : > { %v5390_v42 = vadd.f32 %v524_v39, %v433_v35 }
 0x22e   : > { %v4918_v44 = vpack.i.bf16 %v5388_v38, %v5390_v42  ;;  %v5402_v45 = vpack.c.bf16 %v5388_v38, %v5390_v42  ;;  %v4408_v46 = vpop.f32.mrb[2].mxu0  ;;  %v4425_v47 = vpop.f32.mrb[0].mxu1 }
 0x22f   : > { %v5404_v48 = vadd.f32 %v4408_v46, %v433_v35  ;;  %v534_v49 = vpop.f32.mrb[3].mxu0  ;;  %v692_v52 = vpop.f32.mrb[1].mxu1  ;;  %v698_v23 = vadd.f32 %v4425_v47, %v5414_v54 }
 0x230   : > { %v5406_v53 = vadd.f32 %v534_v49, %v433_v35  ;;  %4728 = vmatpush3.bf16.xpose.msk.msra.mxu1 %vm5394_vm2, %v5402_v45  ;;  %v693_v29 = vadd.f32 %v692_v52, %v5414_v54 }
 0x231   : > { %4733 = vmatprep.subr.bf16.mxu1 %v5141_v33 }
 0x232   : > { %v4923_v56 = vpack.i.bf16 %v5404_v48, %v5406_v53  ;;  %v5421_v57 = vpack.c.bf16 %v5404_v48, %v5406_v53  ;;  %v4428_v59 = vpop.f32.mrb[2].mxu1 }
 0x233   : > { %v4411_v60 = vpop.f32.mrb[4].mxu0  ;;  %v702_v61 = vpop.f32.mrb[3].mxu1  ;;  %v708_v13 = vadd.f32 %v4428_v59, %v5414_v54 }
 0x234   : > { %v5423_v62 = vadd.f32 %v4411_v60, %v433_v35  ;;  %v544_v22 = vpop.f32.mrb[5].mxu0  ;;  %4732 = vmatpush3.bf16.xpose.msk.msra.mxu0 %vm5394_vm2, %v5421_v57  ;;  %v703_v12 = vadd.f32 %v702_v61, %v5414_v54 }
 0x235   : > { %v5429_v63 = vadd.f32 %v544_v22, %v433_v35  ;;  %4737 = vmatprep.subr.bf16.mxu0 %v5141_v33 }
 0x237   : > { %v4928_v0 = vpack.i.bf16 %v5423_v62, %v5429_v63  ;;  %v5436_v2 = vpack.c.bf16 %v5423_v62, %v5429_v63  ;;  %v4414_v3 = vpop.f32.mrb[6].mxu0  ;;  %4434 = vmatmul.mubr.msk.f32.vlgmr.msra.gmra.mrb[4].mxu1 %vm296_vm0, %v693_v29 }
 0x238   : > { %v5439_v4 = vadd.f32 %v4414_v3, %v433_v35  ;;  %v554_v5 = vpop.f32.mrb[7].mxu0  ;;  %4447 = vmatprep.mubr.msk.f32.mxu1 %vm5142_vm1, %v5143_v51 }
 0x239   : > { %v5444_v9 = vadd.f32 %v554_v5, %v433_v35  ;;  %4736 = vmatpush3.bf16.xpose.msk.msra.mxu1 %vm5394_vm2, %v5436_v2 }
 0x23a   : > { %4741 = vmatprep.subr.bf16.mxu1 %v5141_v33 }
 0x23b   : > { %v4933_v30 = vpack.i.bf16 %v5439_v4, %v5444_v9  ;;  %v5454_v10 = vpack.c.bf16 %v5439_v4, %v5444_v9  ;;  %4441 = vmatmul.mubr.msk.f32.vlgmr.msra.gmra.mrb[8].mxu0 %vm296_vm0, %v698_v23 }
 0x23c   : > { %4454 = vmatprep.mubr.msk.f32.mxu0 %vm5142_vm1, %v5143_v51 }
 0x23d   : > { %4740 = vmatpush3.bf16.xpose.msk.msra.mxu0 %vm5394_vm2, %v5454_v10 }
 0x23e   : > { %4747 = vmatprep.subr.bf16.mxu0 %v5141_v33 }
 0x240   : > { %4448 = vmatmul.mubr.msk.f32.vlgmr.msra.gmra.mrb[6].mxu1 %vm296_vm0, %v703_v12 }
 0x241   : > { %4461 = vmatprep.mubr.msk.f32.mxu1 %vm5142_vm1, %v5143_v51 }
 0x244   : > { %4455 = vmatmul.mubr.msk.f32.vlgmr.msra.gmra.mrb[10].mxu0 %vm296_vm0, %v708_v13 }
 0x245   : > { %4475 = vmatprep.mubr.msk.f32.mxu0 %vm5142_vm1, %v5143_v51 }
 0x30a   : > { %v786_v15 = vpop.f32.mrb[4].mxu1 }
 0x30b   : > { %v1027_v16 = vmul.f32 0.17677669, %v786_v15  ;;  %v4435_v40 = vpop.f32.mrb[5].mxu1 }
 0x30d   : > { %v1031_v18 = vsel %vm591_vm3, -3.4028235e+38, %v1027_v16  ;;  %v5499_v16 = vld [vmem:[%s5475_s9 + $0x3] ss:$0 sm:$0xff]  ;;  %s5081_s9 = sshll.u32 %s5145_s29, 4  ;;  %s5082_s9 = int_to_ptr.vmem [resolvable:$false] %s5081_s9 }
 0x30e   : > { %v1036_v31 = vsel %vm1035_vm4, %v1031_v18, -inf  ;;  %v865_v19 = vpop.f32.mrb[8].mxu0  ;;  %vm594_vm7 = vcmp.gt.f32.partialorder %v5499_v16, 0.5  ;;  %p5084_p1 = scmp.lt.s32.totalorder %s6041_s18, %s5082_s9 }
 0x30f   : > { %v1037_v21 = vrot.slane %v1036_v31, 4  ;;  %v1028_v24 = vmul.f32 0.17677669, %v865_v19  ;;  %v4442_v25 = vpop.f32.mrb[9].mxu0 }
 0x311   : > { %v1038_v50 = vmax.f32 %v1036_v31, %v1037_v21  ;;  %v1032_v27 = vsel %vm592_vm5, -3.4028235e+38, %v1028_v24 }
 0x312   : > { %v1043_v41 = vsel %vm1035_vm4, %v1032_v27, -inf }
 0x313   : > { %v1039_v28 = vrot.slane %v1038_v50, 2  ;;  %v1044_v32 = vrot.slane %v1043_v41, 4  ;;  %v944_v35 = vpop.f32.mrb[6].mxu1 }
 0x314   : > { %v1029_v36 = vmul.f32 0.17677669, %v944_v35  ;;  %v4449_v39 = vpop.f32.mrb[7].mxu1 }
 0x315   : > { %v1040_v46 = vmax.f32 %v1038_v50, %v1039_v28  ;;  %v1045_v47 = vmax.f32 %v1043_v41, %v1044_v32 }
 0x316   : > { %v1033_v49 = vsel %vm593_vm6, -3.4028235e+38, %v1029_v36 }
 0x317   : > { %v1041_v52 = vrot.slane %v1040_v46, 1  ;;  %v1046_v59 = vrot.slane %v1045_v47, 2  ;;  %v1050_v60 = vsel %vm1035_vm4, %v1033_v49, -inf  ;;  %v1023_v61 = vpop.f32.mrb[10].mxu0 }
 0x318   : > { %v1051_v22 = vrot.slane %v1050_v60, 4  ;;  %v4456_v29 = vpop.f32.mrb[11].mxu0  ;;  %v1030_v21 = vmul.f32 0.17677669, %v1023_v61 }
 0x319   : > { %v1042_v3 = vmax.f32 %v1040_v46, %v1041_v52  ;;  %v1047_v5 = vmax.f32 %v1045_v47, %v1046_v59 }
 0x31a   : > { %v1052_v23 = vmax.f32 %v1050_v60, %v1051_v22  ;;  %v1034_v28 = vsel %vm594_vm7, -3.4028235e+38, %v1030_v21 }
 0x31b   : > { %v1064_v12 = vsub.f32 %v1031_v18, %v1042_v3  ;;  %v1048_v13 = vrot.slane %v1047_v5, 1  ;;  %v1057_v32 = vsel %vm1035_vm4, %v1034_v28, -inf }
 0x31c   : > { %v1053_v15 = vrot.slane %v1052_v23, 2  ;;  %v1058_v36 = vrot.slane %v1057_v32, 4 }
 0x31d   : > { %v1068_v40 = vmul.f32 1.442695, %v1064_v12  ;;  %v1049_v31 = vmax.f32 %v1047_v5, %v1048_v13 }
 0x31e   : > { %v1054_v19 = vmax.f32 %v1052_v23, %v1053_v15 }
 0x31f   : > { %4956 = vpow2.f32 %v1068_v40  ;;  %v1065_v24 = vsub.f32 %v1032_v27, %v1049_v31  ;;  %v1059_v27 = vmax.f32 %v1057_v32, %v1058_v36 }
 0x320   : > { %v1055_v25 = vrot.slane %v1054_v19, 1 }
 0x321   : > { %v1070_v50 = vmul.f32 1.442695, %v1065_v24  ;;  %v1060_v29 = vrot.slane %v1059_v27, 2 }
 0x322   : > { %v1056_v41 = vmax.f32 %v1054_v19, %v1055_v25 }
 0x323   : > { %4958 = vpow2.f32 %v1070_v50  ;;  %v1061_v40 = vmax.f32 %v1059_v27, %v1060_v29 }
 0x324   : > { %v1066_v18 = vsub.f32 %v1033_v49, %v1056_v41 }
 0x325   : > { %v1062_v25 = vrot.slane %v1061_v40, 1 }
 0x326   : > { %v1072_v35 = vmul.f32 1.442695, %v1066_v18 }
 0x327   : > { %v1063_v32 = vmax.f32 %v1061_v40, %v1062_v25 }
 0x328   : > { %4960 = vpow2.f32 %v1072_v35 }
 0x329   : > { %v4957_v39 = vpop.eup %4956 }
 0x32a   : > { %v1076_v46 = vsel %vm1035_vm4, %v4957_v39, 0.0 }
 0x32b   : > { %v1077_v47 = vrot.slane %v1076_v46, 4 }
 0x32d   : > { %v4959_v52 = vpop.eup %4958  ;;  %v1078_v59 = vadd.f32 %v1077_v47, %v1076_v46  ;;  %v1067_v46 = vsub.f32 %v1034_v28, %v1063_v32 }
 0x32e   : > { %v1083_v60 = vsel %vm1035_vm4, %v4959_v52, 0.0 }
 0x32f   : > { %v1084_v61 = vrot.slane %v1083_v60, 4  ;;  %v1079_v22 = vrot.slane %v1078_v59, 2 }
 0x331   : > { %v1085_v3 = vadd.f32 %v1084_v61, %v1083_v60  ;;  %v1080_v5 = vadd.f32 %v1079_v22, %v1078_v59  ;;  %v1074_v60 = vmul.f32 1.442695, %v1067_v46 }
 0x332   : > { %v4961_v49 = vpop.eup %4960 }
 0x333   : > { %v1090_v23 = vsel %vm1035_vm4, %v4961_v49, 0.0  ;;  %v1081_v12 = vrot.slane %v1080_v5, 1  ;;  %v1086_v13 = vrot.slane %v1085_v3, 2 }
 0x334   : > { %v1091_v15 = vrot.slane %v1090_v23, 4 }
 0x335   : > { %v1082_v31 = vadd.f32 %v1081_v12, %v1080_v5  ;;  %v1087_v19 = vadd.f32 %v1086_v13, %v1085_v3 }
 0x336   : > { %v1092_v21 = vadd.f32 %v1091_v15, %v1090_v23 }
 0x337   : > { %4962 = vrcp.f32 %v1082_v31  ;;  %v1088_v24 = vrot.slane %v1087_v19, 1 }
 0x338   : > { %v1093_v50 = vrot.slane %v1092_v21, 2 }
 0x339   : > { %v1089_v41 = vadd.f32 %v1088_v24, %v1087_v19 }
 0x33a   : > { %v1094_v18 = vadd.f32 %v1093_v50, %v1092_v21 }
 0x33b   : > { %4964 = vrcp.f32 %v1089_v41 }
 0x33c   : > { %v1095_v35 = vrot.slane %v1094_v18, 1 }
 0x33e   : > { %v1096_v36 = vadd.f32 %v1095_v35, %v1094_v18 }
 0x340   : > { %4966 = vrcp.f32 %v1096_v36 }
 0x341   : > { %v4963_v47 = vpop.eup %4962  ;;  %4968 = vpow2.f32 %v1074_v60 }
 0x342   : > { %v1108_v59 = vmul.f32 %v4963_v47, %v4957_v39 }
 0x344   : > { %v1112_v27 = vsel %vm1035_vm4, %v1108_v59, 0.0 }
 0x345   : > { %v4965_v61 = vpop.eup %4964  ;;  %1113 = vadd.xlane.f32.xlu0 %v1112_v27 }
 0x346   : > { %v1109_v22 = vmul.f32 %v4965_v61, %v4959_v52 }
 0x348   : > { %v1115_v29 = vsel %vm1035_vm4, %v1109_v22, 0.0 }
 0x349   : > { %1116 = vadd.xlane.f32.xlu1 %v1115_v29 }
 0x34a   : > { %v4967_v3 = vpop.eup %4966 }
 0x34b   : > { %v1110_v5 = vmul.f32 %v4967_v3, %v4961_v49  ;;  %v4969_v12 = vpop.eup %4968 }
 0x34c   : > { %v1097_v28 = vsel %vm1035_vm4, %v4969_v12, 0.0 }
 0x34d   : > { %v1118_v23 = vsel %vm1035_vm4, %v1110_v5, 0.0  ;;  %v1098_v13 = vrot.slane %v1097_v28, 4 }
 0x34e   : > { %1119 = vadd.xlane.f32.xlu0 %v1118_v23 }
 0x34f   : > { %v1099_v39 = vadd.f32 %v1098_v13, %v1097_v28 }
 0x351   : > { %v1100_v52 = vrot.slane %v1099_v39, 2 }
 0x353   : > { %v1101_v49 = vadd.f32 %v1100_v52, %v1099_v39 }
 0x355   : > { %v1102_v15 = vrot.slane %v1101_v49, 1 }
 0x357   : > { %v1103_v40 = vadd.f32 %v1102_v15, %v1101_v49 }
 0x359   : > { %4970 = vrcp.f32 %v1103_v40 }
 0x35a   : > { %4924 = vrot.lane.b32.xlu1 %v4923_v56, %s5144_s10 }
 0x35e   : > { %4929 = vrot.lane.b32.xlu1 %v4928_v0, %s5144_s10 }
 0x363   : > { %v4971_v31 = vpop.eup %4970 }
 0x364   : > { %4919 = vrot.lane.b32.xlu0 %v4918_v44, %s5144_s10  ;;  %v1111_v19 = vmul.f32 %v4971_v31, %v4969_v12 }
 0x366   : > { %v1121_v21 = vsel %vm1035_vm4, %v1111_v19, 0.0 }
 0x382   : > { %1122 = vadd.xlane.f32.xlu1 %v1121_v21 }
 0x393   : > { %4934 = vrot.lane.b32.xlu1 %v4933_v30, %s5144_s10  ;;  %s5083_s10 = scalar_lea.vmem %s5082_s9, 1024 }
 0x394   : > { %p5085_p2 = scmp.lt.s32.totalorder %s5083_s10, %s5077_s28 }
 0x396   : > { %p5086_p3 = por %p5085_p2, %p5084_p1 }
 0x398   : > { %p5087_p4 = pnand %p5086_p3, %p5080_p0 }
 0x3d2   : > { %v1114_v48 = vpop.xlane.xlu0 %1113 }
 0x3d3   : > { %v1124_v53 = vadd.f32 1e-08, %v1114_v48 }
 0x3d5   : > { %4972 = vrcp.f32 %v1124_v53 }
 0x3d6   : > { %v1117_v56 = vpop.xlane.xlu1 %1116 }
 0x3d7   : > { %v1125_v62 = vadd.f32 1e-08, %v1117_v56 }
 0x3d9   : > { %4974 = vrcp.f32 %v1125_v62 }
 0x3da   : > { %v4925_v38 = vpop.permute.xlu1 %4924 }
 0x3db   : > { %v1120_v42 = vpop.xlane.xlu0 %1119  ;;  %v4927_v9 = vunpack.i.h.bf16 %v4925_v38  ;;  %v4926_v30 = vunpack.i.l.bf16 %v4925_v38 }
 0x3dc   : > { %v1126_v44 = vadd.f32 1e-08, %v1120_v42 }
 0x3dd   : > { %v5532_v46 = vpack.c.bf16 %v4927_v9, %v4926_v30 }
 0x3de   : > { %4976 = vrcp.f32 %v1126_v44  ;;  %v4930_v63 = vpop.permute.xlu1 %4929 }
 0x3df   : > { %v4932_v0 = vunpack.i.h.bf16 %v4930_v63  ;;  %v4931_v24 = vunpack.i.l.bf16 %v4930_v63  ;;  %v4920_v25 = vpop.permute.xlu0 %4919  ;;  %v4973_v4 = vpop.eup %4972 }
 0x3e0   : > { %v4922_v50 = vunpack.i.h.bf16 %v4920_v25  ;;  %v4921_v41 = vunpack.i.l.bf16 %v4920_v25  ;;  %v1132_v35 = vmul.f32 %v4973_v4, %v1108_v59 }
 0x3e1   : > { %v5525_v18 = vpack.c.bf16 %v4932_v0, %v4931_v24 }
 0x3e2   : > { %v5527_v32 = vpack.c.bf16 %v4922_v50, %v4921_v41 }
 0x3e3   : > { %4749 = vmatpush3.bf16.msra.mxu0 %v5525_v18  ;;  %v4975_v36 = vpop.eup %4974 }
 0x3e4   : > { %4743 = vmatpush3.bf16.msra.mxu1 %v5527_v32  ;;  %v1133_v60 = vmul.f32 %v4975_v36, %v1109_v22 }
 0x3e5   : > { %4744 = vmatprep.subr.bf16.mxu1 %v5141_v33 }
 0x3e7   : > { %4462 = vmatmul.mubr.msk.f32.vlgmr.msra.gmra.mrb[8].mxu1 %vm1035_vm4, %v1132_v35 }
 0x3e8   : > { %v4977_v47 = vpop.eup %4976  ;;  %4746 = vmatpush3.bf16.msra.mxu1 %v5532_v46  ;;  %4468 = vmatprep.mubr.msk.f32.mxu1 %vm5142_vm1, %v5143_v51 }
 0x3e9   : > { %v1134_v27 = vmul.f32 %v4977_v47, %v1110_v5  ;;  %4750 = vmatprep.subr.bf16.mxu1 %v5141_v33 }
 0x3eb   : > { %4469 = vmatmul.mubr.msk.f32.vlgmr.msra.gmra.mrb[10].mxu1 %vm1035_vm4, %v1133_v60  ;;  %4476 = vmatmul.mubr.msk.f32.vlgmr.msra.gmra.mrb[12].mxu0 %vm1035_vm4, %v1134_v27  ;;  %v4129_v27 = vld [vmem:[%s6092_s4 + $0x20] sm:$0xff] }
 0x3ec   : > { %4482 = vmatprep.mubr.msk.f32.mxu1 %vm5142_vm1, %v5143_v51 }
 0x40f   : > { %v1123_v59 = vpop.xlane.xlu1 %1122 }
 0x410   : > { %v1127_v61 = vadd.f32 1e-08, %v1123_v59  ;;  %v4130_v59 = vld [vmem:[%s6092_s4 + $0x28] sm:$0xff] }
 0x412   : > { %4978 = vrcp.f32 %v1127_v61  ;;  %v5579_v61 = vpack.c.bf16 %v4130_v59, %v4129_v27 }
 0x413   : > { %v4935_v29 = vpop.permute.xlu1 %4934 }
 0x414   : > { %v4937_v3 = vunpack.i.h.bf16 %v4935_v29  ;;  %v4936_v23 = vunpack.i.l.bf16 %v4935_v29  ;;  %4754 = vmatprep.subr.bf16.mxu0 %v5579_v61  ;;  %v4131_v29 = vld [vmem:[%s6092_s4 + $0x30] sm:$0xff] }
 0x415   : > { %4756 = vmatpush3.bf16.msra.mxu0 %v5579_v61 }
 0x416   : > { %v5543_v12 = vpack.c.bf16 %v4937_v3, %v4936_v23  ;;  %v4132_v3 = vld [vmem:[%s6092_s4 + $0x38] sm:$0xff] }
 0x417   : > { %v5589_v23 = vpack.c.bf16 %v4132_v3, %v4131_v29 }
 0x418   : > { %4752 = vmatpush3.bf16.msra.mxu1 %v5543_v12 }
 0x419   : > { %4758 = vmatprep.subr.bf16.mxu0 %v5589_v23 }
 0x41a   : > { %4760 = vmatpush3.bf16.msra.mxu0 %v5589_v23 }
 0x41b   : > { %4770 = vmatprep.subr.bf16.mxu0 %v5314_v7 }
 0x41c   : > { %v4979_v22 = vpop.eup %4978 }
 0x41d   : > { %v1135_v5 = vmul.f32 %v4979_v22, %v1111_v19 }
 0x41f   : > { %4483 = vmatmul.mubr.msk.f32.vlgmr.msra.gmra.mrb[12].mxu1 %vm1035_vm4, %v1135_v5 }
 0x4ba   : > { %v1211_v28 = vpop.f32.mrb[8].mxu1 }
 0x4bb   : > { %v5548_v13 = vadd.f32 %v1211_v28, %v5242_v8  ;;  %v4463_v39 = vpop.f32.mrb[9].mxu1 }
 0x4bd   : > { %v1456_v52 = vsel %vm296_vm0, %v5548_v13, 0.0 }
 0x4be   : > { %v1369_v49 = vpop.f32.mrb[12].mxu0  ;;  %1457 = vadd.xlane.f32.xlu0 %v1456_v52  ;;  %v1290_v15 = vpop.f32.mrb[10].mxu1 }
 0x4bf   : > { %v5553_v40 = vadd.f32 %v1369_v49, %v5242_v8  ;;  %v5556_v31 = vadd.f32 %v1290_v15, %v5242_v8  ;;  %v4470_v19 = vpop.f32.mrb[11].mxu1  ;;  %v4477_v21 = vpop.f32.mrb[13].mxu0  ;;  %v4133_v49 = vld [vmem:[%s6092_s4 + $0x40] sm:$0xff]  ;;  %v4134_v15 = vld [vmem:[%s6092_s4 + $0x48] sm:$0xff] }
 0x4c0   : > { %v4135_v19 = vld [vmem:[%s6092_s4 + $0x50] sm:$0xff]  ;;  %v5605_v21 = vpack.c.bf16 %v4134_v15, %v4133_v49 }
 0x4c1   : > { %v1462_v48 = vsel %vm296_vm0, %v5553_v40, 0.0  ;;  %v1459_v53 = vsel %vm296_vm0, %v5556_v31, 0.0 }
 0x4c2   : > { %1463 = vadd.xlane.f32.xlu0 %v1462_v48  ;;  %1460 = vadd.xlane.f32.xlu1 %v1459_v53  ;;  %v4136_v48 = vld [vmem:[%s6092_s4 + $0x58] sm:$0xff] }
 0x4c3   : > { %v5610_v53 = vpack.c.bf16 %v4136_v48, %v4135_v19  ;;  %4762 = vmatprep.subr.bf16.mxu1 %v5605_v21 }
 0x4c4   : > { %4764 = vmatpush3.bf16.msra.mxu1 %v5605_v21 }
 0x4c5   : > { %4766 = vmatprep.subr.bf16.mxu1 %v5610_v53 }
 0x4c8   : > { %4768 = vmatpush3.bf16.msra.mxu1 %v5610_v53 }
 0x4c9   : > { %4777 = vmatprep.subr.bf16.mxu1 %v5141_v33 }
 0x4f2   : > { %v1448_v56 = vpop.f32.mrb[12].mxu1 }
 0x4f3   : > { %v5563_v62 = vadd.f32 %v1448_v56, %v5242_v8  ;;  %v4484_v38 = vpop.f32.mrb[13].mxu1 }
 0x4f5   : > { %v1465_v42 = vsel %vm296_vm0, %v5563_v62, 0.0 }
 0x4f6   : > { %1466 = vadd.xlane.f32.xlu0 %v1465_v42 }
 0x54b   : > { %v1458_v44 = vpop.xlane.xlu0 %1457 }
 0x54c   : > { %v1468_v63 = vmul.f32 0.03125, %v1458_v44 }
 0x54e   : > { %v1472_v0 = vsub.f32 %v5548_v13, %v1468_v63 }
 0x54f   : > { %v1464_v24 = vpop.xlane.xlu0 %1463  ;;  %v1461_v25 = vpop.xlane.xlu1 %1460 }
 0x550   : > { %v1470_v50 = vmul.f32 0.03125, %v1464_v24  ;;  %v1469_v41 = vmul.f32 0.03125, %v1461_v25  ;;  %v1476_v4 = vmul.f32 %v1472_v0, %v1472_v0 }
 0x552   : > { %v1474_v9 = vsub.f32 %v5553_v40, %v1470_v50  ;;  %v1473_v30 = vsub.f32 %v5556_v31, %v1469_v41  ;;  %v1480_v8 = vsel %vm296_vm0, %v1476_v4, 0.0  ;;  %v1510_v4 = vsub.s32 4, %v5328_v20 }
 0x553   : > { %1481 = vadd.xlane.f32.xlu0 %v1480_v8  ;;  %v1518_v8 = vsub.s32 5, %v5328_v20 }
 0x554   : > { %v1477_v35 = vmul.f32 %v1473_v30, %v1473_v30  ;;  %v1478_v36 = vmul.f32 %v1474_v9, %v1474_v9 }
 0x556   : > { %v1483_v47 = vsel %vm296_vm0, %v1477_v35, 0.0  ;;  %v1486_v60 = vsel %vm296_vm0, %v1478_v36, 0.0  ;;  %v5620_v35 = vrot.slane %v5334_v34, %v1510_v4 }
 0x557   : > { %1484 = vadd.xlane.f32.xlu1 %v1483_v47  ;;  %1487 = vadd.xlane.f32.xlu0 %v1486_v60  ;;  %v5623_v47 = vrot.slane %v5334_v34, %v1518_v8 }
 0x583   : > { %v1467_v22 = vpop.xlane.xlu0 %1466 }
 0x584   : > { %v1471_v5 = vmul.f32 0.03125, %v1467_v22 }
 0x586   : > { %v1475_v28 = vsub.f32 %v5563_v62, %v1471_v5 }
 0x588   : > { %v1479_v39 = vmul.f32 %v1475_v28, %v1475_v28 }
 0x58a   : > { %v1489_v52 = vsel %vm296_vm0, %v1479_v39, 0.0 }
 0x58b   : > { %1490 = vadd.xlane.f32.xlu1 %v1489_v52 }
 0x5e0   : > { %v1482_v56 = vpop.xlane.xlu0 %1481 }
 0x5e1   : > { %v1492_v38 = vmul.f32 0.03125, %v1482_v56 }
 0x5e3   : > { %v1496_v42 = vadd.f32 1e-05, %v1492_v38  ;;  %v5644_v38 = vrot.slane %v5385_v58, %v416_v37 }
 0x5e4   : > { %v1485_v44 = vpop.xlane.xlu1 %1484  ;;  %v1488_v63 = vpop.xlane.xlu0 %1487 }
 0x5e5   : > { %4980 = vrsqrt.f32 %v1496_v42  ;;  %v1493_v24 = vmul.f32 0.03125, %v1485_v44  ;;  %v1494_v25 = vmul.f32 0.03125, %v1488_v63 }
 0x5e7   : > { %v1497_v50 = vadd.f32 1e-05, %v1493_v24  ;;  %v1498_v41 = vadd.f32 1e-05, %v1494_v25 }
 0x5e9   : > { %4982 = vrsqrt.f32 %v1497_v50 }
 0x5ea   : > { %4984 = vrsqrt.f32 %v1498_v41 }
 0x5ef   : > { %v4981_v36 = vpop.eup %4980 }
 0x5f0   : > { %v1504_v60 = vmul.f32 %v4981_v36, %v1472_v0 }
 0x5f2   : > { %v1512_v27 = vmul.f32 %v5620_v35, %v1504_v60  ;;  %v5663_v60 = vrot.slane %v5385_v58, %v611_v55 }
 0x5f3   : > { %v4983_v59 = vpop.eup %4982 }
 0x5f4   : > { %v4985_v29 = vpop.eup %4984  ;;  %v1505_v3 = vmul.f32 %v4983_v59, %v1473_v30  ;;  %v1520_v22 = vadd.f32 %v5623_v47, %v1512_v27 }
 0x5f5   : > { %v1506_v5 = vmul.f32 %v4985_v29, %v1474_v9 }
 0x5f6   : > { %4493 = vmatprep.mubr.msk.f32.mxu0 %vm296_vm0, %v1520_v22  ;;  %v1513_v39 = vmul.f32 %v5620_v35, %v1505_v3 }
 0x5f7   : > { %v1514_v52 = vmul.f32 %v5620_v35, %v1506_v5 }
 0x5f8   : > { %v1521_v49 = vadd.f32 %v5623_v47, %v1513_v39 }
 0x5f9   : > { %v1522_v34 = vadd.f32 %v5623_v47, %v1514_v52 }
 0x5fa   : > { %4494 = vmatmul.mubr.msk.f32.vlgmr.msra.gmra.mrb[14].mxu0 %vm296_vm0, %v1521_v49 }
 0x5fb   : > { %4496 = vmatprep.mubr.msk.f32.mxu0 %vm296_vm0, %v1522_v34  ;;  %4772 = vmatpush3.bf16.msra.mxu0 %v5314_v7 }
 0x5fc   : > { %4774 = vmatprep.subr.bf16.mxu0 %v5324_v11 }
 0x5ff   : > { %4776 = vmatpush3.bf16.msra.mxu0 %v5324_v11 }
 0x600   : > { %4781 = vmatprep.subr.bf16.mxu0 %v5141_v33 }
 0x618   : > { %v1491_v0 = vpop.xlane.xlu1 %1490 }
 0x619   : > { %v1495_v9 = vmul.f32 0.03125, %v1491_v0 }
 0x61b   : > { %v1499_v30 = vadd.f32 1e-05, %v1495_v9 }
 0x61d   : > { %4986 = vrsqrt.f32 %v1499_v30 }
 0x627   : > { %v4987_v15 = vpop.eup %4986 }
 0x628   : > { %v1507_v19 = vmul.f32 %v4987_v15, %v1475_v28 }
 0x62a   : > { %v1515_v48 = vmul.f32 %v5620_v35, %v1507_v19 }
 0x62c   : > { %v1523_v56 = vadd.f32 %v5623_v47, %v1515_v48 }
 0x62e   : > { %4497 = vmatmul.mubr.msk.f32.gmra.mrb[16].mxu0 %vm296_vm0, %v1523_v56 }
 0x6cd   : > { %v4495_v42 = vpop.f32.mrb[14].mxu0 }
 0x6ce   : > { %v1612_v44 = vadd.f32 %v4495_v42, %v5644_v38  ;;  %v1606_v63 = vpop.f32.mrb[15].mxu0 }
 0x6cf   : > { %v1607_v24 = vadd.f32 %v1606_v63, %v5644_v38 }
 0x6d0   : > { %v1626_v50 = vmax.f32 %v1612_v44, 0.0 }
 0x6d1   : > { %v1625_v25 = vmax.f32 %v1607_v24, 0.0 }
 0x6d3   : > { %4507 = vmatprep.mubr.msk.f32.mxu1 %vm296_vm0, %v1625_v25 }
 0x6d4   : > { %4508 = vmatmul.mubr.msk.f32.vlgmr.msra.gmra.mrb[14].mxu1 %vm296_vm0, %v1626_v50 }
 0x6d5   : > { %4780 = vmatpush3.bf16.xpose.msk.msra.mxu1 %vm5394_vm2, %v5402_v45 }
 0x6d6   : > { %4785 = vmatprep.subr.bf16.mxu1 %v5141_v33 }
 0x701   : > { %v4498_v37 = vpop.f32.mrb[16].mxu0 }
 0x702   : > { %v1622_v28 = vadd.f32 %v4498_v37, %v5644_v38  ;;  %v1616_v41 = vpop.f32.mrb[17].mxu0 }
 0x703   : > { %v1617_v4 = vadd.f32 %v1616_v41, %v5644_v38 }
 0x704   : > { %v1628_v36 = vmax.f32 %v1622_v28, 0.0 }
 0x705   : > { %v1627_v8 = vmax.f32 %v1617_v4, 0.0 }
 0x707   : > { %4510 = vmatprep.mubr.msk.f32.mxu1 %vm296_vm0, %v1627_v8 }
 0x708   : > { %4511 = vmatmul.mubr.msk.f32.gmra.mrb[16].mxu1 %vm296_vm0, %v1628_v36 }
 0x709   : > { %4531 = vmatprep.mubr.msk.f32.mxu1 %vm5142_vm1, %v5143_v51 }
 0x7a7   : > { %v4509_v27 = vpop.f32.mrb[14].mxu1 }
 0x7a8   : > { %v1717_v59 = vadd.f32 %v4509_v27, %v5663_v60  ;;  %v1711_v29 = vpop.f32.mrb[15].mxu1 }
 0x7a9   : > { %v1712_v3 = vadd.f32 %v1711_v29, %v5663_v60 }
 0x7aa   : > { %v5668_v22 = vadd.f32 %v1717_v59, %v5556_v31 }
 0x7ab   : > { %v5671_v5 = vadd.f32 %v1712_v3, %v5548_v13 }
 0x7ac   : > { %v1737_v39 = vsel %vm296_vm0, %v5668_v22, 0.0 }
 0x7ad   : > { %1738 = vadd.xlane.f32.xlu1 %v1737_v39  ;;  %v1734_v55 = vsel %vm296_vm0, %v5671_v5, 0.0 }
 0x7ae   : > { %1735 = vadd.xlane.f32.xlu0 %v1734_v55 }
 0x7db   : > { %v4512_v58 = vpop.f32.mrb[16].mxu1 }
 0x7dc   : > { %v1727_v52 = vadd.f32 %v4512_v58, %v5663_v60  ;;  %v1721_v49 = vpop.f32.mrb[17].mxu1 }
 0x7dd   : > { %v1722_v34 = vadd.f32 %v1721_v49, %v5663_v60 }
 0x7de   : > { %v5680_v31 = vadd.f32 %v1727_v52, %v5563_v62 }
 0x7df   : > { %v5683_v13 = vadd.f32 %v1722_v34, %v5553_v40 }
 0x7e0   : > { %v1743_v0 = vsel %vm296_vm0, %v5680_v31, 0.0 }
 0x7e1   : > { %1744 = vadd.xlane.f32.xlu1 %v1743_v0  ;;  %v1740_v9 = vsel %vm296_vm0, %v5683_v13, 0.0 }
 0x7e2   : > { %1741 = vadd.xlane.f32.xlu0 %v1740_v9 }
 0x83a   : > { %v1739_v30 = vpop.xlane.xlu1 %1738 }
 0x83b   : > { %v1747_v15 = vmul.f32 0.03125, %v1739_v30  ;;  %v1736_v19 = vpop.xlane.xlu0 %1735 }
 0x83c   : > { %v1746_v48 = vmul.f32 0.03125, %v1736_v19 }
 0x83d   : > { %v1751_v56 = vsub.f32 %v5668_v22, %v1747_v15 }
 0x83e   : > { %v1750_v62 = vsub.f32 %v5671_v5, %v1746_v48 }
 0x83f   : > { %v1755_v42 = vmul.f32 %v1751_v56, %v1751_v56 }
 0x840   : > { %v1754_v44 = vmul.f32 %v1750_v62, %v1750_v62 }
 0x841   : > { %v1761_v40 = vsel %vm296_vm0, %v1755_v42, 0.0 }
 0x842   : > { %1762 = vadd.xlane.f32.xlu1 %v1761_v40  ;;  %v1758_v63 = vsel %vm296_vm0, %v1754_v44, 0.0 }
 0x843   : > { %1759 = vadd.xlane.f32.xlu0 %v1758_v63 }
 0x86e   : > { %v1745_v24 = vpop.xlane.xlu1 %1744 }
 0x86f   : > { %v1749_v25 = vmul.f32 0.03125, %v1745_v24  ;;  %v1742_v50 = vpop.xlane.xlu0 %1741 }
 0x870   : > { %v1748_v37 = vmul.f32 0.03125, %v1742_v50 }
 0x871   : > { %v1753_v28 = vsub.f32 %v5680_v31, %v1749_v25 }
 0x872   : > { %v1752_v41 = vsub.f32 %v5683_v13, %v1748_v37 }
 0x873   : > { %v1757_v4 = vmul.f32 %v1753_v28, %v1753_v28 }
 0x874   : > { %v1756_v8 = vmul.f32 %v1752_v41, %v1752_v41 }
 0x875   : > { %v1767_v36 = vsel %vm296_vm0, %v1757_v4, 0.0 }
 0x876   : > { %1768 = vadd.xlane.f32.xlu1 %v1767_v36  ;;  %v1764_v27 = vsel %vm296_vm0, %v1756_v8, 0.0 }
 0x877   : > { %1765 = vadd.xlane.f32.xlu0 %v1764_v27 }
 0x8cf   : > { %v1763_v59 = vpop.xlane.xlu1 %1762 }
 0x8d0   : > { %v1771_v29 = vmul.f32 0.03125, %v1763_v59  ;;  %v1760_v3 = vpop.xlane.xlu0 %1759 }
 0x8d1   : > { %v1770_v39 = vmul.f32 0.03125, %v1760_v3 }
 0x8d2   : > { %v1775_v55 = vadd.f32 1e-05, %v1771_v29 }
 0x8d3   : > { %v1774_v58 = vadd.f32 1e-05, %v1770_v39 }
 0x8d4   : > { %4988 = vrsqrt.f32 %v1775_v55 }
 0x8d5   : > { %4990 = vrsqrt.f32 %v1774_v58 }
 0x8de   : > { %v4989_v52 = vpop.eup %4988 }
 0x8df   : > { %v4991_v49 = vpop.eup %4990  ;;  %v1783_v34 = vmul.f32 %v4989_v52, %v1751_v56 }
 0x8e0   : > { %v1782_v0 = vmul.f32 %v4991_v49, %v1750_v62 }
 0x8e1   : > { %v1787_v9 = vmul.f32 %v1783_v34, %v5352_v1 }
 0x8e2   : > { %v1786_v30 = vmul.f32 %v1782_v0, %v5352_v1 }
 0x8e3   : > { %v1791_v19 = vadd.f32 %v1787_v9, %v5356_v6 }
 0x8e4   : > { %v1790_v15 = vadd.f32 %v1786_v30, %v5356_v6 }
 0x8e6   : > { %4521 = vmatprep.mubr.msk.f32.mxu0 %vm296_vm0, %v1790_v15 }
 0x8e7   : > { %4522 = vmatmul.mubr.msk.f32.vlgmr.msra.gmra.mrb[18].mxu0 %vm296_vm0, %v1791_v19 }
 0x8e8   : > { %4784 = vmatpush3.bf16.xpose.msk.msra.mxu0 %vm5394_vm2, %v5421_v57 }
 0x8e9   : > { %4789 = vmatprep.subr.bf16.mxu0 %v5141_v33 }
 0x903   : > { %v1769_v48 = vpop.xlane.xlu1 %1768 }
 0x904   : > { %v1773_v56 = vmul.f32 0.03125, %v1769_v48  ;;  %v1766_v62 = vpop.xlane.xlu0 %1765 }
 0x905   : > { %v1772_v42 = vmul.f32 0.03125, %v1766_v62 }
 0x906   : > { %v1777_v44 = vadd.f32 1e-05, %v1773_v56 }
 0x907   : > { %v1776_v40 = vadd.f32 1e-05, %v1772_v42 }
 0x908   : > { %4992 = vrsqrt.f32 %v1777_v44 }
 0x909   : > { %4994 = vrsqrt.f32 %v1776_v40 }
 0x912   : > { %v4993_v63 = vpop.eup %4992 }
 0x913   : > { %v4995_v24 = vpop.eup %4994  ;;  %v1785_v25 = vmul.f32 %v4993_v63, %v1753_v28 }
 0x914   : > { %v1784_v50 = vmul.f32 %v4995_v24, %v1752_v41 }
 0x915   : > { %v1789_v37 = vmul.f32 %v1785_v25, %v5352_v1 }
 0x916   : > { %v1788_v4 = vmul.f32 %v1784_v50, %v5352_v1 }
 0x917   : > { %v1793_v36 = vadd.f32 %v1789_v37, %v5356_v6 }
 0x918   : > { %v1792_v8 = vadd.f32 %v1788_v4, %v5356_v6 }
 0x91a   : > { %4524 = vmatprep.mubr.msk.f32.mxu0 %vm296_vm0, %v1792_v8 }
 0x91b   : > { %4525 = vmatmul.mubr.msk.f32.gmra.mrb[20].mxu0 %vm296_vm0, %v1793_v36 }
 0x91c   : > { %4538 = vmatprep.mubr.msk.f32.mxu0 %vm5142_vm1, %v5143_v51 }
 0x9ba   : > { %v4523_v27 = vpop.f32.mrb[18].mxu0 }
 0x9bb   : > { %v1878_v59 = vadd.f32 %v4523_v27, %v5414_v54  ;;  %v1872_v28 = vpop.f32.mrb[19].mxu0 }
 0x9bc   : > { %v1873_v41 = vadd.f32 %v1872_v28, %v5414_v54 }
 0x9bd   : > { %4539 = vmatmul.mubr.msk.f32.vlgmr.msra.gmra.mrb[22].mxu0 %vm296_vm0, %v1878_v59 }
 0x9be   : > { %4792 = vmatpush3.bf16.xpose.msk.msra.mxu0 %vm5394_vm2, %v5454_v10  ;;  %4532 = vmatmul.mubr.msk.f32.vlgmr.msra.gmra.mrb[18].mxu1 %vm296_vm0, %v1873_v41 }
 0x9bf   : > { %4788 = vmatpush3.bf16.xpose.msk.msra.mxu1 %vm5394_vm2, %v5436_v2  ;;  %4552 = vmatprep.mubr.msk.f32.mxu0 %vm5142_vm1, %v5143_v51 }
 0x9c0   : > { %4799 = vmatprep.subr.bf16.mxu0 %v5141_v33  ;;  %4545 = vmatprep.mubr.msk.f32.mxu1 %vm5142_vm1, %v5143_v51 }
 0x9c1   : > { %4793 = vmatprep.subr.bf16.mxu1 %v5141_v33 }
 0x9ee   : > { %v4526_v29 = vpop.f32.mrb[20].mxu0 }
 0x9ef   : > { %v1888_v3 = vadd.f32 %v4526_v29, %v5414_v54  ;;  %v1882_v39 = vpop.f32.mrb[21].mxu0 }
 0x9f0   : > { %v1883_v55 = vadd.f32 %v1882_v39, %v5414_v54 }
 0x9f1   : > { %4553 = vmatmul.mubr.msk.f32.vlgmr.msra.gmra.mrb[24].mxu0 %vm296_vm0, %v1888_v3 }
 0x9f2   : > { %4801 = vmatpush3.bf16.msra.mxu0 %v5525_v18  ;;  %4546 = vmatmul.mubr.msk.f32.vlgmr.msra.gmra.mrb[20].mxu1 %vm296_vm0, %v1883_v55 }
 0x9f3   : > { %4795 = vmatpush3.bf16.msra.mxu1 %v5527_v32  ;;  %4559 = vmatprep.mubr.msk.f32.mxu1 %vm5142_vm1, %v5143_v51 }
 0x9f4   : > { %4796 = vmatprep.subr.bf16.mxu1 %v5141_v33  ;;  %4573 = vmatprep.mubr.msk.f32.mxu0 %vm5142_vm1, %v5143_v51 }
 0x9f5   : > { %4806 = vmatprep.subr.bf16.mxu0 %v5579_v61 }
 0xa90   : > { %v2033_v58 = vpop.f32.mrb[22].mxu0 }
 0xa91   : > { %v2184_v52 = vmul.f32 0.17677669, %v2033_v58  ;;  %v1960_v49 = vpop.f32.mrb[18].mxu1  ;;  %v4540_v34 = vpop.f32.mrb[23].mxu0 }
 0xa92   : > { %v2183_v0 = vmul.f32 0.17677669, %v1960_v49  ;;  %v4533_v9 = vpop.f32.mrb[19].mxu1 }
 0xa93   : > { %v2188_v30 = vsel %vm592_vm5, -3.4028235e+38, %v2184_v52 }
 0xa94   : > { %v2198_v15 = vsel %vm1035_vm4, %v2188_v30, -inf  ;;  %v2187_v19 = vsel %vm591_vm3, -3.4028235e+38, %v2183_v0 }
 0xa95   : > { %v2199_v48 = vrot.slane %v2198_v15, 4  ;;  %v2191_v56 = vsel %vm1035_vm4, %v2187_v19, -inf }
 0xa96   : > { %v2192_v62 = vrot.slane %v2191_v56, 4 }
 0xa97   : > { %v2200_v42 = vmax.f32 %v2198_v15, %v2199_v48 }
 0xa98   : > { %v2193_v44 = vmax.f32 %v2191_v56, %v2192_v62 }
 0xa99   : > { %v2201_v40 = vrot.slane %v2200_v42, 2 }
 0xa9a   : > { %v2194_v63 = vrot.slane %v2193_v44, 2 }
 0xa9b   : > { %v2202_v24 = vmax.f32 %v2200_v42, %v2201_v40 }
 0xa9c   : > { %v2195_v25 = vmax.f32 %v2193_v44, %v2194_v63 }
 0xa9d   : > { %v2203_v50 = vrot.slane %v2202_v24, 1 }
 0xa9e   : > { %v2196_v37 = vrot.slane %v2195_v25, 1 }
 0xa9f   : > { %v2204_v4 = vmax.f32 %v2202_v24, %v2203_v50 }
 0xaa0   : > { %v2197_v8 = vmax.f32 %v2195_v25, %v2196_v37 }
 0xaa1   : > { %v2220_v36 = vsub.f32 %v2188_v30, %v2204_v4 }
 0xaa2   : > { %v2219_v27 = vsub.f32 %v2187_v19, %v2197_v8 }
 0xaa3   : > { %v2225_v59 = vmul.f32 1.442695, %v2220_v36 }
 0xaa4   : > { %v2223_v28 = vmul.f32 1.442695, %v2219_v27 }
 0xaa5   : > { %4996 = vpow2.f32 %v2225_v59 }
 0xaa6   : > { %4998 = vpow2.f32 %v2223_v28 }
 0xaaf   : > { %v4997_v41 = vpop.eup %4996 }
 0xab0   : > { %v4999_v29 = vpop.eup %4998  ;;  %v2238_v3 = vsel %vm1035_vm4, %v4997_v41, 0.0 }
 0xab1   : > { %v2239_v39 = vrot.slane %v2238_v3, 4  ;;  %v2231_v55 = vsel %vm1035_vm4, %v4999_v29, 0.0 }
 0xab2   : > { %v2232_v58 = vrot.slane %v2231_v55, 4 }
 0xab3   : > { %v2240_v52 = vadd.f32 %v2239_v39, %v2238_v3 }
 0xab4   : > { %v2233_v49 = vadd.f32 %v2232_v58, %v2231_v55 }
 0xab5   : > { %v2241_v34 = vrot.slane %v2240_v52, 2 }
 0xab6   : > { %v2234_v0 = vrot.slane %v2233_v49, 2 }
 0xab7   : > { %v2242_v9 = vadd.f32 %v2241_v34, %v2240_v52 }
 0xab8   : > { %v2235_v15 = vadd.f32 %v2234_v0, %v2233_v49 }
 0xab9   : > { %v2243_v30 = vrot.slane %v2242_v9, 1 }
 0xaba   : > { %v2236_v19 = vrot.slane %v2235_v15, 1 }
 0xabb   : > { %v2244_v48 = vadd.f32 %v2243_v30, %v2242_v9 }
 0xabc   : > { %v2237_v56 = vadd.f32 %v2236_v19, %v2235_v15 }
 0xabd   : > { %5000 = vrcp.f32 %v2244_v48 }
 0xabe   : > { %5002 = vrcp.f32 %v2237_v56 }
 0xac4   : > { %v2179_v62 = vpop.f32.mrb[24].mxu0 }
 0xac5   : > { %v2186_v42 = vmul.f32 0.17677669, %v2179_v62  ;;  %v2106_v44 = vpop.f32.mrb[20].mxu1  ;;  %v4554_v40 = vpop.f32.mrb[25].mxu0 }
 0xac6   : > { %v2185_v63 = vmul.f32 0.17677669, %v2106_v44  ;;  %v4547_v24 = vpop.f32.mrb[21].mxu1 }
 0xac7   : > { %v5001_v25 = vpop.eup %5000  ;;  %v2190_v50 = vsel %vm594_vm7, -3.4028235e+38, %v2186_v42 }
 0xac8   : > { %v5003_v37 = vpop.eup %5002  ;;  %v2212_v4 = vsel %vm1035_vm4, %v2190_v50, -inf  ;;  %v2189_v8 = vsel %vm593_vm6, -3.4028235e+38, %v2185_v63  ;;  %v5756_v36 = vmul.f32 %v5001_v25, %v4997_v41 }
 0xac9   : > { %v2213_v27 = vrot.slane %v2212_v4, 4  ;;  %v2205_v59 = vsel %vm1035_vm4, %v2189_v8, -inf  ;;  %v2263_v28 = vmul.f32 %v5003_v37, %v4999_v29 }
 0xaca   : > { %v2206_v3 = vrot.slane %v2205_v59, 4  ;;  %v2270_v39 = vsel %vm1035_vm4, %v5756_v36, 0.0 }
 0xacb   : > { %v2214_v55 = vmax.f32 %v2212_v4, %v2213_v27  ;;  %2271 = vadd.xlane.f32.xlu1 %v2270_v39  ;;  %v2267_v58 = vsel %vm1035_vm4, %v2263_v28, 0.0 }
 0xacc   : > { %v2207_v52 = vmax.f32 %v2205_v59, %v2206_v3  ;;  %2268 = vadd.xlane.f32.xlu0 %v2267_v58 }
 0xacd   : > { %v2215_v49 = vrot.slane %v2214_v55, 2 }
 0xace   : > { %v2208_v34 = vrot.slane %v2207_v52, 2 }
 0xacf   : > { %v2216_v0 = vmax.f32 %v2214_v55, %v2215_v49 }
 0xad0   : > { %v2209_v9 = vmax.f32 %v2207_v52, %v2208_v34 }
 0xad1   : > { %v2217_v41 = vrot.slane %v2216_v0, 1 }
 0xad2   : > { %v2210_v15 = vrot.slane %v2209_v9, 1 }
 0xad3   : > { %v2218_v30 = vmax.f32 %v2216_v0, %v2217_v41 }
 0xad4   : > { %v2211_v19 = vmax.f32 %v2209_v9, %v2210_v15 }
 0xad5   : > { %v2222_v48 = vsub.f32 %v2190_v50, %v2218_v30 }
 0xad6   : > { %v2221_v29 = vsub.f32 %v2189_v8, %v2211_v19 }
 0xad7   : > { %v2229_v56 = vmul.f32 1.442695, %v2222_v48 }
 0xad8   : > { %v2227_v62 = vmul.f32 1.442695, %v2221_v29 }
 0xad9   : > { %5004 = vpow2.f32 %v2229_v56 }
 0xada   : > { %5006 = vpow2.f32 %v2227_v62 }
 0xae3   : > { %v5005_v42 = vpop.eup %5004 }
 0xae4   : > { %v5007_v44 = vpop.eup %5006  ;;  %v2252_v40 = vsel %vm1035_vm4, %v5005_v42, 0.0 }
 0xae5   : > { %v2253_v63 = vrot.slane %v2252_v40, 4  ;;  %v2245_v24 = vsel %vm1035_vm4, %v5007_v44, 0.0 }
 0xae6   : > { %v2246_v25 = vrot.slane %v2245_v24, 4 }
 0xae7   : > { %v2254_v37 = vadd.f32 %v2253_v63, %v2252_v40 }
 0xae8   : > { %v2247_v4 = vadd.f32 %v2246_v25, %v2245_v24 }
 0xae9   : > { %v2255_v27 = vrot.slane %v2254_v37, 2 }
 0xaea   : > { %v2248_v59 = vrot.slane %v2247_v4, 2 }
 0xaeb   : > { %v2256_v3 = vadd.f32 %v2255_v27, %v2254_v37 }
 0xaec   : > { %v2249_v39 = vadd.f32 %v2248_v59, %v2247_v4 }
 0xaed   : > { %v2257_v50 = vrot.slane %v2256_v3, 1 }
 0xaee   : > { %v2250_v8 = vrot.slane %v2249_v39, 1 }
 0xaef   : > { %v2258_v55 = vadd.f32 %v2257_v50, %v2256_v3 }
 0xaf0   : > { %v2251_v58 = vadd.f32 %v2250_v8, %v2249_v39 }
 0xaf1   : > { %5008 = vrcp.f32 %v2258_v55 }
 0xaf2   : > { %5010 = vrcp.f32 %v2251_v58 }
 0xafb   : > { %v5009_v52 = vpop.eup %5008 }
 0xafc   : > { %v5011_v49 = vpop.eup %5010  ;;  %v2266_v34 = vmul.f32 %v5009_v52, %v5005_v42 }
 0xafd   : > { %v2265_v0 = vmul.f32 %v5011_v49, %v5007_v44 }
 0xafe   : > { %v2276_v9 = vsel %vm1035_vm4, %v2266_v34, 0.0 }
 0xaff   : > { %2277 = vadd.xlane.f32.xlu1 %v2276_v9  ;;  %v2273_v41 = vsel %vm1035_vm4, %v2265_v0, 0.0 }
 0xb00   : > { %2274 = vadd.xlane.f32.xlu0 %v2273_v41 }
 0xb58   : > { %v2272_v15 = vpop.xlane.xlu1 %2271 }
 0xb59   : > { %v2269_v30 = vpop.xlane.xlu0 %2268  ;;  %v2280_v19 = vadd.f32 1e-08, %v2272_v15 }
 0xb5a   : > { %v2279_v48 = vadd.f32 1e-08, %v2269_v30 }
 0xb5c   : > { %5012 = vrcp.f32 %v2279_v48 }
 0xb5d   : > { %5014 = vrcp.f32 %v2280_v19 }
 0xb66   : > { %v5013_v29 = vpop.eup %5012 }
 0xb67   : > { %v2287_v56 = vmul.f32 %v5013_v29, %v2263_v28  ;;  %v5015_v62 = vpop.eup %5014 }
 0xb68   : > { %v2288_v42 = vmul.f32 %v5015_v62, %v5756_v36 }
 0xb69   : > { %4560 = vmatmul.mubr.msk.f32.vlgmr.msra.gmra.mrb[22].mxu1 %vm1035_vm4, %v2287_v56 }
 0xb6a   : > { %4798 = vmatpush3.bf16.msra.mxu1 %v5532_v46  ;;  %4566 = vmatprep.mubr.msk.f32.mxu1 %vm5142_vm1, %v5143_v51 }
 0xb6b   : > { %4802 = vmatprep.subr.bf16.mxu1 %v5141_v33 }
 0xb6d   : > { %4567 = vmatmul.mubr.msk.f32.vlgmr.msra.gmra.mrb[24].mxu1 %vm1035_vm4, %v2288_v42 }
 0xb6e   : > { %4804 = vmatpush3.bf16.msra.mxu1 %v5543_v12  ;;  %4580 = vmatprep.mubr.msk.f32.mxu1 %vm5142_vm1, %v5143_v51 }
 0xb6f   : > { %4814 = vmatprep.subr.bf16.mxu1 %v5605_v21 }
 0xb8c   : > { %v2278_v28 = vpop.xlane.xlu1 %2277 }
 0xb8d   : > { %v2282_v44 = vadd.f32 1e-08, %v2278_v28  ;;  %v2275_v40 = vpop.xlane.xlu0 %2274 }
 0xb8e   : > { %v2281_v63 = vadd.f32 1e-08, %v2275_v40 }
 0xb8f   : > { %5016 = vrcp.f32 %v2282_v44 }
 0xb90   : > { %5018 = vrcp.f32 %v2281_v63 }
 0xb99   : > { %v5017_v24 = vpop.eup %5016 }
 0xb9a   : > { %v5019_v25 = vpop.eup %5018  ;;  %v2290_v37 = vmul.f32 %v5017_v24, %v2266_v34 }
 0xb9b   : > { %v2289_v4 = vmul.f32 %v5019_v25, %v2265_v0 }
 0xb9c   : > { %4581 = vmatmul.mubr.msk.f32.vlgmr.msra.gmra.mrb[26].mxu1 %vm1035_vm4, %v2290_v37 }
 0xb9d   : > { %4574 = vmatmul.mubr.msk.f32.vlgmr.msra.gmra.mrb[26].mxu0 %vm1035_vm4, %v2289_v4  ;;  %4816 = vmatpush3.bf16.msra.mxu1 %v5605_v21 }
 0xb9e   : > { %4808 = vmatpush3.bf16.msra.mxu0 %v5579_v61  ;;  %4818 = vmatprep.subr.bf16.mxu1 %v5610_v53 }
 0xb9f   : > { %4810 = vmatprep.subr.bf16.mxu0 %v5589_v23 }
 0xba1   : > { %4820 = vmatpush3.bf16.msra.mxu1 %v5610_v53 }
 0xba2   : > { %4812 = vmatpush3.bf16.msra.mxu0 %v5589_v23  ;;  %4829 = vmatprep.subr.bf16.mxu1 %v5141_v33 }
 0xba3   : > { %4822 = vmatprep.subr.bf16.mxu0 %v5314_v7 }
 0xc3c   : > { %v2360_v36 = vpop.f32.mrb[22].mxu1 }
 0xc3d   : > { %v5788_v27 = vadd.f32 %v2360_v36, %v5671_v5  ;;  %v4561_v59 = vpop.f32.mrb[23].mxu1 }
 0xc3f   : > { %v2587_v3 = vsel %vm296_vm0, %v5788_v27, 0.0 }
 0xc40   : > { %2588 = vadd.xlane.f32.xlu0 %v2587_v3  ;;  %v2433_v39 = vpop.f32.mrb[24].mxu1 }
 0xc41   : > { %v5793_v50 = vadd.f32 %v2433_v39, %v5668_v22  ;;  %v4568_v8 = vpop.f32.mrb[25].mxu1 }
 0xc43   : > { %v2590_v55 = vsel %vm296_vm0, %v5793_v50, 0.0 }
 0xc44   : > { %2591 = vadd.xlane.f32.xlu1 %v2590_v55 }
 0xc6f   : > { %v2579_v58 = vpop.f32.mrb[26].mxu1 }
 0xc70   : > { %v5798_v52 = vadd.f32 %v2579_v58, %v5680_v31  ;;  %v2506_v5 = vpop.f32.mrb[26].mxu0  ;;  %v4582_v49 = vpop.f32.mrb[27].mxu1 }
 0xc71   : > { %v5801_v34 = vadd.f32 %v2506_v5, %v5683_v13  ;;  %v4575_v0 = vpop.f32.mrb[27].mxu0 }
 0xc72   : > { %v2596_v9 = vsel %vm296_vm0, %v5798_v52, 0.0 }
 0xc73   : > { %2597 = vadd.xlane.f32.xlu1 %v2596_v9  ;;  %v2593_v22 = vsel %vm296_vm0, %v5801_v34, 0.0 }
 0xc74   : > { %2594 = vadd.xlane.f32.xlu0 %v2593_v22 }
 0xccd   : > { %v2589_v41 = vpop.xlane.xlu0 %2588 }
 0xcce   : > { %v2599_v15 = vmul.f32 0.03125, %v2589_v41 }
 0xcd0   : > { %v2603_v30 = vsub.f32 %v5788_v27, %v2599_v15 }
 0xcd1   : > { %v2592_v31 = vpop.xlane.xlu1 %2591 }
 0xcd2   : > { %v2600_v19 = vmul.f32 0.03125, %v2592_v31  ;;  %v2607_v48 = vmul.f32 %v2603_v30, %v2603_v30 }
 0xcd4   : > { %v2604_v29 = vsub.f32 %v5793_v50, %v2600_v19  ;;  %v2611_v13 = vsel %vm296_vm0, %v2607_v48, 0.0 }
 0xcd5   : > { %2612 = vadd.xlane.f32.xlu0 %v2611_v13 }
 0xcd6   : > { %v2608_v56 = vmul.f32 %v2604_v29, %v2604_v29 }
 0xcd8   : > { %v2614_v62 = vsel %vm296_vm0, %v2608_v56, 0.0 }
 0xcd9   : > { %2615 = vadd.xlane.f32.xlu1 %v2614_v62 }
 0xd00   : > { %v2598_v42 = vpop.xlane.xlu1 %2597 }
 0xd01   : > { %v2602_v28 = vmul.f32 0.03125, %v2598_v42  ;;  %v2595_v44 = vpop.xlane.xlu0 %2594 }
 0xd02   : > { %v2601_v40 = vmul.f32 0.03125, %v2595_v44 }
 0xd03   : > { %v2606_v63 = vsub.f32 %v5798_v52, %v2602_v28 }
 0xd04   : > { %v2605_v24 = vsub.f32 %v5801_v34, %v2601_v40 }
 0xd05   : > { %v2610_v25 = vmul.f32 %v2606_v63, %v2606_v63 }
 0xd06   : > { %v2609_v37 = vmul.f32 %v2605_v24, %v2605_v24 }
 0xd07   : > { %v2620_v4 = vsel %vm296_vm0, %v2610_v25, 0.0 }
 0xd08   : > { %2621 = vadd.xlane.f32.xlu1 %v2620_v4  ;;  %v2617_v36 = vsel %vm296_vm0, %v2609_v37, 0.0 }
 0xd09   : > { %2618 = vadd.xlane.f32.xlu0 %v2617_v36 }
 0xd62   : > { %v2613_v59 = vpop.xlane.xlu0 %2612 }
 0xd63   : > { %v2623_v3 = vmul.f32 0.03125, %v2613_v59 }
 0xd65   : > { %v2627_v39 = vadd.f32 1e-05, %v2623_v3 }
 0xd66   : > { %v2616_v8 = vpop.xlane.xlu1 %2615 }
 0xd67   : > { %5020 = vrsqrt.f32 %v2627_v39  ;;  %v2624_v55 = vmul.f32 0.03125, %v2616_v8 }
 0xd69   : > { %v2628_v58 = vadd.f32 1e-05, %v2624_v55 }
 0xd6b   : > { %5022 = vrsqrt.f32 %v2628_v58 }
 0xd71   : > { %v5021_v5 = vpop.eup %5020 }
 0xd72   : > { %v2635_v49 = vmul.f32 %v5021_v5, %v2603_v30 }
 0xd74   : > { %v2639_v0 = vmul.f32 %v2635_v49, %v5620_v35 }
 0xd75   : > { %v5023_v9 = vpop.eup %5022 }
 0xd76   : > { %v2636_v22 = vmul.f32 %v5023_v9, %v2604_v29  ;;  %v2643_v41 = vadd.f32 %v2639_v0, %v5623_v47 }
 0xd78   : > { %4591 = vmatprep.mubr.msk.f32.mxu0 %vm296_vm0, %v2643_v41  ;;  %v2640_v15 = vmul.f32 %v2636_v22, %v5620_v35 }
 0xd7a   : > { %v2644_v31 = vadd.f32 %v2640_v15, %v5623_v47 }
 0xd7c   : > { %4592 = vmatmul.mubr.msk.f32.vlgmr.msra.gmra.mrb[28].mxu0 %vm296_vm0, %v2644_v31 }
 0xd7d   : > { %4824 = vmatpush3.bf16.msra.mxu0 %v5314_v7 }
 0xd7e   : > { %4826 = vmatprep.subr.bf16.mxu0 %v5324_v11 }
 0xd81   : > { %4828 = vmatpush3.bf16.msra.mxu0 %v5324_v11 }
 0xd82   : > { %4833 = vmatprep.subr.bf16.mxu0 %v5141_v33 }
 0xd95   : > { %v2622_v30 = vpop.xlane.xlu1 %2621 }
 0xd96   : > { %v2626_v19 = vmul.f32 0.03125, %v2622_v30  ;;  %v2619_v48 = vpop.xlane.xlu0 %2618 }
 0xd97   : > { %v2625_v29 = vmul.f32 0.03125, %v2619_v48 }
 0xd98   : > { %v2630_v13 = vadd.f32 1e-05, %v2626_v19 }
 0xd99   : > { %v2629_v56 = vadd.f32 1e-05, %v2625_v29 }
 0xd9a   : > { %5024 = vrsqrt.f32 %v2630_v13 }
 0xd9b   : > { %5026 = vrsqrt.f32 %v2629_v56 }
 0xda4   : > { %v5025_v62 = vpop.eup %5024 }
 0xda5   : > { %v5027_v42 = vpop.eup %5026  ;;  %v2638_v28 = vmul.f32 %v5025_v62, %v2606_v63 }
 0xda6   : > { %v2637_v44 = vmul.f32 %v5027_v42, %v2605_v24 }
 0xda7   : > { %v2642_v7 = vmul.f32 %v2638_v28, %v5620_v35 }
 0xda8   : > { %v2641_v40 = vmul.f32 %v2637_v44, %v5620_v35 }
 0xda9   : > { %v2646_v25 = vadd.f32 %v2642_v7, %v5623_v47 }
 0xdaa   : > { %v2645_v11 = vadd.f32 %v2641_v40, %v5623_v47 }
 0xdac   : > { %4594 = vmatprep.mubr.msk.f32.mxu0 %vm296_vm0, %v2645_v11 }
 0xdad   : > { %4595 = vmatmul.mubr.msk.f32.gmra.mrb[30].mxu0 %vm296_vm0, %v2646_v25 }
 0xe4f   : > { %v4593_v37 = vpop.f32.mrb[28].mxu0 }
 0xe50   : > { %v2731_v4 = vadd.f32 %v4593_v37, %v5644_v38  ;;  %v2725_v36 = vpop.f32.mrb[29].mxu0 }
 0xe51   : > { %v2726_v59 = vadd.f32 %v2725_v36, %v5644_v38 }
 0xe52   : > { %v2745_v24 = vmax.f32 %v2731_v4, 0.0 }
 0xe53   : > { %v2744_v63 = vmax.f32 %v2726_v59, 0.0 }
 0xe55   : > { %4605 = vmatprep.mubr.msk.f32.mxu1 %vm296_vm0, %v2744_v63 }
 0xe56   : > { %4606 = vmatmul.mubr.msk.f32.vlgmr.msra.gmra.mrb[28].mxu1 %vm296_vm0, %v2745_v24 }
 0xe57   : > { %4832 = vmatpush3.bf16.xpose.msk.msra.mxu1 %vm5394_vm2, %v5402_v45 }
 0xe58   : > { %4837 = vmatprep.subr.bf16.mxu1 %v5141_v33 }
 0xe80   : > { %v4596_v3 = vpop.f32.mrb[30].mxu0 }
 0xe81   : > { %v2741_v39 = vadd.f32 %v4596_v3, %v5644_v38  ;;  %v2735_v8 = vpop.f32.mrb[31].mxu0 }
 0xe82   : > { %v2736_v55 = vadd.f32 %v2735_v8, %v5644_v38 }
 0xe83   : > { %v2747_v5 = vmax.f32 %v2741_v39, 0.0 }
 0xe84   : > { %v2746_v58 = vmax.f32 %v2736_v55, 0.0 }
 0xe86   : > { %4608 = vmatprep.mubr.msk.f32.mxu1 %vm296_vm0, %v2746_v58 }
 0xe87   : > { %4609 = vmatmul.mubr.msk.f32.gmra.mrb[30].mxu1 %vm296_vm0, %v2747_v5 }
 0xe88   : > { %4629 = vmatprep.mubr.msk.f32.mxu1 %vm5142_vm1, %v5143_v51 }
 0xf29   : > { %v4607_v49 = vpop.f32.mrb[28].mxu1 }
 0xf2a   : > { %v2832_v45 = vadd.f32 %v4607_v49, %v5663_v60  ;;  %v2826_v0 = vpop.f32.mrb[29].mxu1 }
 0xf2b   : > { %v2827_v9 = vadd.f32 %v2826_v0, %v5663_v60 }
 0xf2c   : > { %v5848_v22 = vadd.f32 %v2832_v45, %v5793_v50 }
 0xf2d   : > { %v5851_v41 = vadd.f32 %v2827_v9, %v5788_v27 }
 0xf2e   : > { %v2852_v15 = vsel %vm296_vm0, %v5848_v22, 0.0 }
 0xf2f   : > { %2853 = vadd.xlane.f32.xlu1 %v2852_v15  ;;  %v2849_v31 = vsel %vm296_vm0, %v5851_v41, 0.0 }
 0xf30   : > { %2850 = vadd.xlane.f32.xlu0 %v2849_v31 }
 0xf5a   : > { %v4610_v30 = vpop.f32.mrb[30].mxu1 }
 0xf5b   : > { %v2842_v19 = vadd.f32 %v4610_v30, %v5663_v60  ;;  %v2836_v48 = vpop.f32.mrb[31].mxu1 }
 0xf5c   : > { %v2837_v29 = vadd.f32 %v2836_v48, %v5663_v60 }
 0xf5d   : > { %v5860_v50 = vadd.f32 %v2842_v19, %v5798_v52 }
 0xf5e   : > { %v5863_v27 = vadd.f32 %v2837_v29, %v5801_v34 }
 0xf5f   : > { %v2858_v13 = vsel %vm296_vm0, %v5860_v50, 0.0 }
 0xf60   : > { %2859 = vadd.xlane.f32.xlu1 %v2858_v13  ;;  %v2855_v56 = vsel %vm296_vm0, %v5863_v27, 0.0 }
 0xf61   : > { %2856 = vadd.xlane.f32.xlu0 %v2855_v56 }
 0xfbc   : > { %v2854_v62 = vpop.xlane.xlu1 %2853 }
 0xfbd   : > { %v2862_v42 = vmul.f32 0.03125, %v2854_v62  ;;  %v2851_v28 = vpop.xlane.xlu0 %2850 }
 0xfbe   : > { %v2861_v44 = vmul.f32 0.03125, %v2851_v28 }
 0xfbf   : > { %v2866_v7 = vsub.f32 %v5848_v22, %v2862_v42 }
 0xfc0   : > { %v2865_v52 = vsub.f32 %v5851_v41, %v2861_v44 }
 0xfc1   : > { %v2870_v40 = vmul.f32 %v2866_v7, %v2866_v7 }
 0xfc2   : > { %v2869_v11 = vmul.f32 %v2865_v52, %v2865_v52 }
 0xfc3   : > { %v2876_v34 = vsel %vm296_vm0, %v2870_v40, 0.0 }
 0xfc4   : > { %2877 = vadd.xlane.f32.xlu1 %v2876_v34  ;;  %v2873_v25 = vsel %vm296_vm0, %v2869_v11, 0.0 }
 0xfc5   : > { %2874 = vadd.xlane.f32.xlu0 %v2873_v25 }
 0xfed   : > { %v2860_v37 = vpop.xlane.xlu1 %2859 }
 0xfee   : > { %v2864_v4 = vmul.f32 0.03125, %v2860_v37  ;;  %v2857_v36 = vpop.xlane.xlu0 %2856 }
 0xfef   : > { %v2863_v59 = vmul.f32 0.03125, %v2857_v36 }
 0xff0   : > { %v2868_v63 = vsub.f32 %v5860_v50, %v2864_v4 }
 0xff1   : > { %v2867_v24 = vsub.f32 %v5863_v27, %v2863_v59 }
 0xff2   : > { %v2872_v3 = vmul.f32 %v2868_v63, %v2868_v63 }
 0xff3   : > { %v2871_v39 = vmul.f32 %v2867_v24, %v2867_v24 }
 0xff4   : > { %v2882_v8 = vsel %vm296_vm0, %v2872_v3, 0.0 }
 0xff5   : > { %2883 = vadd.xlane.f32.xlu1 %v2882_v8  ;;  %v2879_v55 = vsel %vm296_vm0, %v2871_v39, 0.0 }
 0xff6   : > { %2880 = vadd.xlane.f32.xlu0 %v2879_v55 }
0x1051   : > { %v2878_v58 = vpop.xlane.xlu1 %2877 }
0x1052   : > { %v2886_v5 = vmul.f32 0.03125, %v2878_v58  ;;  %v2875_v49 = vpop.xlane.xlu0 %2874 }
0x1053   : > { %v2885_v45 = vmul.f32 0.03125, %v2875_v49 }
0x1054   : > { %v2890_v0 = vadd.f32 1e-05, %v2886_v5 }
0x1055   : > { %v2889_v9 = vadd.f32 1e-05, %v2885_v45 }
0x1056   : > { %5028 = vrsqrt.f32 %v2890_v0 }
0x1057   : > { %5030 = vrsqrt.f32 %v2889_v9 }
0x1060   : > { %v5029_v15 = vpop.eup %5028 }
0x1061   : > { %v5031_v31 = vpop.eup %5030  ;;  %v2898_v30 = vmul.f32 %v5029_v15, %v2866_v7 }
0x1062   : > { %v2897_v19 = vmul.f32 %v5031_v31, %v2865_v52 }
0x1063   : > { %v2902_v48 = vmul.f32 %v2898_v30, %v5352_v1 }
0x1064   : > { %v2901_v29 = vmul.f32 %v2897_v19, %v5352_v1 }
0x1065   : > { %v2906_v56 = vadd.f32 %v2902_v48, %v5356_v6 }
0x1066   : > { %v2905_v13 = vadd.f32 %v2901_v29, %v5356_v6 }
0x1068   : > { %4619 = vmatprep.mubr.msk.f32.mxu0 %vm296_vm0, %v2905_v13 }
0x1069   : > { %4620 = vmatmul.mubr.msk.f32.vlgmr.msra.gmra.mrb[32].mxu0 %vm296_vm0, %v2906_v56 }
0x106a   : > { %4836 = vmatpush3.bf16.xpose.msk.msra.mxu0 %vm5394_vm2, %v5421_v57 }
0x106b   : > { %4841 = vmatprep.subr.bf16.mxu0 %v5141_v33 }
0x1082   : > { %v2884_v62 = vpop.xlane.xlu1 %2883 }
0x1083   : > { %v2888_v42 = vmul.f32 0.03125, %v2884_v62  ;;  %v2881_v28 = vpop.xlane.xlu0 %2880 }
0x1084   : > { %v2887_v44 = vmul.f32 0.03125, %v2881_v28 }
0x1085   : > { %v2892_v7 = vadd.f32 1e-05, %v2888_v42 }
0x1086   : > { %v2891_v52 = vadd.f32 1e-05, %v2887_v44 }
0x1087   : > { %5032 = vrsqrt.f32 %v2892_v7 }
0x1088   : > { %5034 = vrsqrt.f32 %v2891_v52 }
0x1091   : > { %v5033_v40 = vpop.eup %5032 }
0x1092   : > { %v5035_v11 = vpop.eup %5034  ;;  %v2900_v34 = vmul.f32 %v5033_v40, %v2868_v63 }
0x1093   : > { %v2899_v25 = vmul.f32 %v5035_v11, %v2867_v24 }
0x1094   : > { %v2904_v37 = vmul.f32 %v2900_v34, %v5352_v1 }
0x1095   : > { %v2903_v4 = vmul.f32 %v2899_v25, %v5352_v1 }
0x1096   : > { %v2908_v36 = vadd.f32 %v2904_v37, %v5356_v6 }
0x1097   : > { %v2907_v57 = vadd.f32 %v2903_v4, %v5356_v6 }
0x1099   : > { %4622 = vmatprep.mubr.msk.f32.mxu0 %vm296_vm0, %v2907_v57 }
0x109a   : > { %4623 = vmatmul.mubr.msk.f32.gmra.mrb[34].mxu0 %vm296_vm0, %v2908_v36 }
0x109b   : > { %4636 = vmatprep.mubr.msk.f32.mxu0 %vm5142_vm1, %v5143_v51 }
0x113c   : > { %v4621_v59 = vpop.f32.mrb[32].mxu0 }
0x113d   : > { %v2993_v3 = vadd.f32 %v4621_v59, %v5414_v54  ;;  %v2987_v63 = vpop.f32.mrb[33].mxu0 }
0x113e   : > { %v2988_v24 = vadd.f32 %v2987_v63, %v5414_v54 }
0x113f   : > { %4637 = vmatmul.mubr.msk.f32.vlgmr.msra.gmra.mrb[36].mxu0 %vm296_vm0, %v2993_v3 }
0x1140   : > { %4844 = vmatpush3.bf16.xpose.msk.msra.mxu0 %vm5394_vm2, %v5454_v10  ;;  %4630 = vmatmul.mubr.msk.f32.vlgmr.msra.gmra.mrb[32].mxu1 %vm296_vm0, %v2988_v24 }
0x1141   : > { %4840 = vmatpush3.bf16.xpose.msk.msra.mxu1 %vm5394_vm2, %v5436_v2  ;;  %4650 = vmatprep.mubr.msk.f32.mxu0 %vm5142_vm1, %v5143_v51 }
0x1142   : > { %4851 = vmatprep.subr.bf16.mxu0 %v5141_v33  ;;  %4643 = vmatprep.mubr.msk.f32.mxu1 %vm5142_vm1, %v5143_v51 }
0x1143   : > { %4845 = vmatprep.subr.bf16.mxu1 %v5141_v33 }
0x116d   : > { %v4624_v1 = vpop.f32.mrb[34].mxu0 }
0x116e   : > { %v3003_v6 = vadd.f32 %v4624_v1, %v5414_v54  ;;  %v2997_v10 = vpop.f32.mrb[35].mxu0 }
0x116f   : > { %v2998_v39 = vadd.f32 %v2997_v10, %v5414_v54 }
0x1170   : > { %4651 = vmatmul.mubr.msk.f32.vlgmr.msra.gmra.mrb[38].mxu0 %vm296_vm0, %v3003_v6 }
0x1171   : > { %4853 = vmatpush3.bf16.msra.mxu0 %v5525_v18  ;;  %4644 = vmatmul.mubr.msk.f32.vlgmr.msra.gmra.mrb[34].mxu1 %vm296_vm0, %v2998_v39 }
0x1172   : > { %4847 = vmatpush3.bf16.msra.mxu1 %v5527_v32  ;;  %4657 = vmatprep.mubr.msk.f32.mxu1 %vm5142_vm1, %v5143_v51 }
0x1173   : > { %4848 = vmatprep.subr.bf16.mxu1 %v5141_v33  ;;  %4671 = vmatprep.mubr.msk.f32.mxu0 %vm5142_vm1, %v5143_v51 }
0x1174   : > { %4858 = vmatprep.subr.bf16.mxu0 %v5579_v61 }
0x1212   : > { %v3148_v43 = vpop.f32.mrb[36].mxu0 }
0x1213   : > { %v3299_v54 = vmul.f32 0.17677669, %v3148_v43  ;;  %v3075_v2 = vpop.f32.mrb[32].mxu1  ;;  %v4638_v8 = vpop.f32.mrb[37].mxu0 }
0x1214   : > { %v3298_v55 = vmul.f32 0.17677669, %v3075_v2  ;;  %v4631_v18 = vpop.f32.mrb[33].mxu1 }
0x1215   : > { %v3303_v58 = vsel %vm592_vm5, -3.4028235e+38, %v3299_v54 }
0x1216   : > { %v3313_v32 = vsel %vm1035_vm4, %v3303_v58, -inf  ;;  %v3302_v5 = vsel %vm591_vm3, -3.4028235e+38, %v3298_v55 }
0x1217   : > { %v3314_v49 = vrot.slane %v3313_v32, 4  ;;  %v3306_v45 = vsel %vm1035_vm4, %v3302_v5, -inf }
0x1218   : > { %v3307_v0 = vrot.slane %v3306_v45, 4 }
0x1219   : > { %v3315_v9 = vmax.f32 %v3313_v32, %v3314_v49 }
0x121a   : > { %v3308_v15 = vmax.f32 %v3306_v45, %v3307_v0 }
0x121b   : > { %v3316_v31 = vrot.slane %v3315_v9, 2 }
0x121c   : > { %v3309_v30 = vrot.slane %v3308_v15, 2 }
0x121d   : > { %v3317_v19 = vmax.f32 %v3315_v9, %v3316_v31 }
0x121e   : > { %v3310_v48 = vmax.f32 %v3308_v15, %v3309_v30 }
0x121f   : > { %v3318_v29 = vrot.slane %v3317_v19, 1 }
0x1220   : > { %v3311_v13 = vrot.slane %v3310_v48, 1 }
0x1221   : > { %v3319_v56 = vmax.f32 %v3317_v19, %v3318_v29 }
0x1222   : > { %v3312_v17 = vmax.f32 %v3310_v48, %v3311_v13 }
0x1223   : > { %v3335_v62 = vsub.f32 %v3303_v58, %v3319_v56 }
0x1224   : > { %v3334_v42 = vsub.f32 %v3302_v5, %v3312_v17 }
0x1225   : > { %v3340_v28 = vmul.f32 1.442695, %v3335_v62 }
0x1226   : > { %v3338_v44 = vmul.f32 1.442695, %v3334_v42 }
0x1227   : > { %5036 = vpow2.f32 %v3340_v28 }
0x1228   : > { %5038 = vpow2.f32 %v3338_v44 }
0x1231   : > { %v5037_v14 = vpop.eup %5036 }
0x1232   : > { %v5039_v7 = vpop.eup %5038  ;;  %v3353_v52 = vsel %vm1035_vm4, %v5037_v14, 0.0 }
0x1233   : > { %v3354_v40 = vrot.slane %v3353_v52, 4  ;;  %v3346_v11 = vsel %vm1035_vm4, %v5039_v7, 0.0 }
0x1234   : > { %v3347_v34 = vrot.slane %v3346_v11, 4 }
0x1235   : > { %v3355_v25 = vadd.f32 %v3354_v40, %v3353_v52 }
0x1236   : > { %v3348_v37 = vadd.f32 %v3347_v34, %v3346_v11 }
0x1237   : > { %v3356_v4 = vrot.slane %v3355_v25, 2 }
0x1238   : > { %v3349_v57 = vrot.slane %v3348_v37, 2 }
0x1239   : > { %v3357_v36 = vadd.f32 %v3356_v4, %v3355_v25 }
0x123a   : > { %v3350_v59 = vadd.f32 %v3349_v57, %v3348_v37 }
0x123b   : > { %v3358_v3 = vrot.slane %v3357_v36, 1 }
0x123c   : > { %v3351_v63 = vrot.slane %v3350_v59, 1 }
0x123d   : > { %v3359_v24 = vadd.f32 %v3358_v3, %v3357_v36 }
0x123e   : > { %v3352_v1 = vadd.f32 %v3351_v63, %v3350_v59 }
0x123f   : > { %5040 = vrcp.f32 %v3359_v24 }
0x1240   : > { %5042 = vrcp.f32 %v3352_v1 }
0x1243   : > { %v3294_v6 = vpop.f32.mrb[38].mxu0 }
0x1244   : > { %v3301_v10 = vmul.f32 0.17677669, %v3294_v6  ;;  %v3221_v39 = vpop.f32.mrb[34].mxu1  ;;  %v4652_v43 = vpop.f32.mrb[39].mxu0 }
0x1245   : > { %v3300_v54 = vmul.f32 0.17677669, %v3221_v39  ;;  %v4645_v2 = vpop.f32.mrb[35].mxu1 }
0x1246   : > { %v3305_v8 = vsel %vm594_vm7, -3.4028235e+38, %v3301_v10 }
0x1247   : > { %v3327_v55 = vsel %vm1035_vm4, %v3305_v8, -inf  ;;  %v3304_v18 = vsel %vm593_vm6, -3.4028235e+38, %v3300_v54 }
0x1248   : > { %v3328_v58 = vrot.slane %v3327_v55, 4  ;;  %v3320_v32 = vsel %vm1035_vm4, %v3304_v18, -inf }
0x1249   : > { %v5041_v5 = vpop.eup %5040  ;;  %v3321_v49 = vrot.slane %v3320_v32, 4 }
0x124a   : > { %v5043_v45 = vpop.eup %5042  ;;  %v3329_v0 = vmax.f32 %v3327_v55, %v3328_v58  ;;  %v3379_v9 = vmul.f32 %v5041_v5, %v5037_v14 }
0x124b   : > { %v3322_v15 = vmax.f32 %v3320_v32, %v3321_v49  ;;  %v3378_v31 = vmul.f32 %v5043_v45, %v5039_v7 }
0x124c   : > { %v3330_v30 = vrot.slane %v3329_v0, 2  ;;  %v3385_v19 = vsel %vm1035_vm4, %v3379_v9, 0.0 }
0x124d   : > { %v3323_v16 = vrot.slane %v3322_v15, 2  ;;  %3386 = vadd.xlane.f32.xlu1 %v3385_v19  ;;  %v3382_v48 = vsel %vm1035_vm4, %v3378_v31, 0.0 }
0x124e   : > { %v3331_v29 = vmax.f32 %v3329_v0, %v3330_v30  ;;  %3383 = vadd.xlane.f32.xlu0 %v3382_v48 }
0x124f   : > { %v3324_v26 = vmax.f32 %v3322_v15, %v3323_v16 }
0x1250   : > { %v3332_v13 = vrot.slane %v3331_v29, 1 }
0x1251   : > { %v3325_v56 = vrot.slane %v3324_v26, 1 }
0x1252   : > { %v3333_v17 = vmax.f32 %v3331_v29, %v3332_v13 }
0x1253   : > { %v3326_v62 = vmax.f32 %v3324_v26, %v3325_v56 }
0x1254   : > { %v3337_v42 = vsub.f32 %v3305_v8, %v3333_v17 }
0x1255   : > { %v3336_v28 = vsub.f32 %v3304_v18, %v3326_v62 }
0x1256   : > { %v3344_v44 = vmul.f32 1.442695, %v3337_v42 }
0x1257   : > { %v3342_v14 = vmul.f32 1.442695, %v3336_v28 }
0x1258   : > { %5044 = vpow2.f32 %v3344_v44 }
0x1259   : > { %5046 = vpow2.f32 %v3342_v14 }
0x1262   : > { %v5045_v7 = vpop.eup %5044 }
0x1263   : > { %v5047_v52 = vpop.eup %5046  ;;  %v3367_v40 = vsel %vm1035_vm4, %v5045_v7, 0.0 }
0x1264   : > { %v3368_v11 = vrot.slane %v3367_v40, 4  ;;  %v3360_v34 = vsel %vm1035_vm4, %v5047_v52, 0.0 }
0x1265   : > { %v3361_v25 = vrot.slane %v3360_v34, 4 }
0x1266   : > { %v3369_v37 = vadd.f32 %v3368_v11, %v3367_v40 }
0x1267   : > { %v3362_v4 = vadd.f32 %v3361_v25, %v3360_v34 }
0x1268   : > { %v3370_v57 = vrot.slane %v3369_v37, 2 }
0x1269   : > { %v3363_v36 = vrot.slane %v3362_v4, 2 }
0x126a   : > { %v3371_v59 = vadd.f32 %v3370_v57, %v3369_v37 }
0x126b   : > { %v3364_v3 = vadd.f32 %v3363_v36, %v3362_v4 }
0x126c   : > { %v3372_v63 = vrot.slane %v3371_v59, 1 }
0x126d   : > { %v3365_v24 = vrot.slane %v3364_v3, 1 }
0x126e   : > { %v3373_v1 = vadd.f32 %v3372_v63, %v3371_v59 }
0x126f   : > { %v3366_v6 = vadd.f32 %v3365_v24, %v3364_v3 }
0x1270   : > { %5048 = vrcp.f32 %v3373_v1 }
0x1271   : > { %5050 = vrcp.f32 %v3366_v6 }
0x127a   : > { %v5049_v10 = vpop.eup %5048 }
0x127b   : > { %v5051_v39 = vpop.eup %5050  ;;  %v3381_v43 = vmul.f32 %v5049_v10, %v5045_v7 }
0x127c   : > { %v3380_v54 = vmul.f32 %v5051_v39, %v5047_v52 }
0x127d   : > { %v3391_v2 = vsel %vm1035_vm4, %v3381_v43, 0.0 }
0x127e   : > { %3392 = vadd.xlane.f32.xlu1 %v3391_v2  ;;  %v3388_v8 = vsel %vm1035_vm4, %v3380_v54, 0.0 }
0x127f   : > { %3389 = vadd.xlane.f32.xlu0 %v3388_v8 }
0x12da   : > { %v3387_v55 = vpop.xlane.xlu1 %3386 }
0x12db   : > { %v3384_v18 = vpop.xlane.xlu0 %3383  ;;  %v3395_v58 = vadd.f32 1e-08, %v3387_v55 }
0x12dc   : > { %v3394_v32 = vadd.f32 1e-08, %v3384_v18 }
0x12de   : > { %5052 = vrcp.f32 %v3394_v32 }
0x12df   : > { %5054 = vrcp.f32 %v3395_v58 }
0x12e8   : > { %v5053_v5 = vpop.eup %5052 }
0x12e9   : > { %v3402_v49 = vmul.f32 %v5053_v5, %v3378_v31  ;;  %v5055_v45 = vpop.eup %5054 }
0x12ea   : > { %v3403_v0 = vmul.f32 %v5055_v45, %v3379_v9 }
0x12eb   : > { %4658 = vmatmul.mubr.msk.f32.vlgmr.msra.gmra.mrb[36].mxu1 %vm1035_vm4, %v3402_v49 }
0x12ec   : > { %4850 = vmatpush3.bf16.msra.mxu1 %v5532_v46  ;;  %4664 = vmatprep.mubr.msk.f32.mxu1 %vm5142_vm1, %v5143_v51 }
0x12ed   : > { %4854 = vmatprep.subr.bf16.mxu1 %v5141_v33 }
0x12ef   : > { %4665 = vmatmul.mubr.msk.f32.vlgmr.msra.gmra.mrb[38].mxu1 %vm1035_vm4, %v3403_v0 }
0x12f0   : > { %4856 = vmatpush3.bf16.msra.mxu1 %v5543_v12  ;;  %4678 = vmatprep.mubr.msk.f32.mxu1 %vm5142_vm1, %v5143_v51 }
0x12f1   : > { %4866 = vmatprep.subr.bf16.mxu1 %v5605_v21 }
0x130b   : > { %v3393_v15 = vpop.xlane.xlu1 %3392 }
0x130c   : > { %v3397_v31 = vadd.f32 1e-08, %v3393_v15  ;;  %v3390_v30 = vpop.xlane.xlu0 %3389 }
0x130d   : > { %v3396_v19 = vadd.f32 1e-08, %v3390_v30 }
0x130e   : > { %5056 = vrcp.f32 %v3397_v31 }
0x130f   : > { %5058 = vrcp.f32 %v3396_v19 }
0x1318   : > { %v5057_v46 = vpop.eup %5056 }
0x1319   : > { %v5059_v16 = vpop.eup %5058  ;;  %v3405_v48 = vmul.f32 %v5057_v46, %v3381_v43 }
0x131a   : > { %v3404_v33 = vmul.f32 %v5059_v16, %v3380_v54 }
0x131b   : > { %4679 = vmatmul.mubr.msk.f32.vlgmr.msra.gmra.mrb[40].mxu1 %vm1035_vm4, %v3405_v48 }
0x131c   : > { %4672 = vmatmul.mubr.msk.f32.vlgmr.msra.gmra.mrb[40].mxu0 %vm1035_vm4, %v3404_v33  ;;  %4868 = vmatpush3.bf16.msra.mxu1 %v5605_v21 }
0x131d   : > { %4860 = vmatpush3.bf16.msra.mxu0 %v5579_v61  ;;  %4870 = vmatprep.subr.bf16.mxu1 %v5610_v53 }
0x131e   : > { %4862 = vmatprep.subr.bf16.mxu0 %v5589_v23 }
0x1320   : > { %4872 = vmatpush3.bf16.msra.mxu1 %v5610_v53 }
0x1321   : > { %4864 = vmatpush3.bf16.msra.mxu0 %v5589_v23 }
0x13be   : > { %v3475_v51 = vpop.f32.mrb[36].mxu1 }
0x13bf   : > { %v5962_v12 = vadd.f32 %v3475_v51, %v5851_v41  ;;  %v4659_v9 = vpop.f32.mrb[37].mxu1 }
0x13c1   : > { %v3702_v29 = vsel %vm296_vm0, %v5962_v12, 0.0 }
0x13c2   : > { %3703 = vadd.xlane.f32.xlu0 %v3702_v29  ;;  %v3548_v21 = vpop.f32.mrb[38].mxu1 }
0x13c3   : > { %v5967_v61 = vadd.f32 %v3548_v21, %v5848_v22  ;;  %v4666_v26 = vpop.f32.mrb[39].mxu1 }
0x13c5   : > { %v3705_v13 = vsel %vm296_vm0, %v5967_v61, 0.0 }
0x13c6   : > { %3706 = vadd.xlane.f32.xlu1 %v3705_v13 }
0x13ee   : > { %v3694_v53 = vpop.f32.mrb[40].mxu1 }
0x13ef   : > { %v5972_v23 = vadd.f32 %v3694_v53, %v5860_v50  ;;  %v3621_v41 = vpop.f32.mrb[40].mxu0  ;;  %v4680_v56 = vpop.f32.mrb[41].mxu1 }
0x13f0   : > { %v5975_v17 = vadd.f32 %v3621_v41, %v5863_v27  ;;  %v4673_v62 = vpop.f32.mrb[41].mxu0 }
0x13f1   : > { %v3711_v42 = vsel %vm296_vm0, %v5972_v23, 0.0 }
0x13f2   : > { %3712 = vadd.xlane.f32.xlu1 %v3711_v42  ;;  %v3708_v22 = vsel %vm296_vm0, %v5975_v17, 0.0 }
0x13f3   : > { %3709 = vadd.xlane.f32.xlu0 %v3708_v22 }
0x144f   : > { %v3704_v28 = vpop.xlane.xlu0 %3703 }
0x1450   : > { %v3714_v44 = vmul.f32 0.03125, %v3704_v28 }
0x1452   : > { %v3718_v14 = vsub.f32 %v5962_v12, %v3714_v44 }
0x1453   : > { %v3707_v50 = vpop.xlane.xlu1 %3706 }
0x1454   : > { %v3715_v7 = vmul.f32 0.03125, %v3707_v50  ;;  %v3722_v52 = vmul.f32 %v3718_v14, %v3718_v14 }
0x1456   : > { %v3719_v40 = vsub.f32 %v5967_v61, %v3715_v7  ;;  %v3726_v27 = vsel %vm296_vm0, %v3722_v52, 0.0 }
0x1457   : > { %3727 = vadd.xlane.f32.xlu0 %v3726_v27 }
0x1458   : > { %v3723_v11 = vmul.f32 %v3719_v40, %v3719_v40 }
0x145a   : > { %v3729_v34 = vsel %vm296_vm0, %v3723_v11, 0.0 }
0x145b   : > { %3730 = vadd.xlane.f32.xlu1 %v3729_v34 }
0x147f   : > { %v3713_v25 = vpop.xlane.xlu1 %3712 }
0x1480   : > { %v3717_v37 = vmul.f32 0.03125, %v3713_v25  ;;  %v3710_v4 = vpop.xlane.xlu0 %3709 }
0x1481   : > { %v3716_v57 = vmul.f32 0.03125, %v3710_v4 }
0x1482   : > { %v3721_v36 = vsub.f32 %v5972_v23, %v3717_v37 }
0x1483   : > { %v3720_v59 = vsub.f32 %v5975_v17, %v3716_v57 }
0x1484   : > { %v3725_v3 = vmul.f32 %v3721_v36, %v3721_v36 }
0x1485   : > { %v3724_v63 = vmul.f32 %v3720_v59, %v3720_v59 }
0x1486   : > { %v3735_v24 = vsel %vm296_vm0, %v3725_v3, 0.0 }
0x1487   : > { %3736 = vadd.xlane.f32.xlu1 %v3735_v24  ;;  %v3732_v1 = vsel %vm296_vm0, %v3724_v63, 0.0 }
0x1488   : > { %3733 = vadd.xlane.f32.xlu0 %v3732_v1 }
0x14e4   : > { %v3728_v6 = vpop.xlane.xlu0 %3727 }
0x14e5   : > { %v3738_v10 = vmul.f32 0.03125, %v3728_v6 }
0x14e7   : > { %v3742_v39 = vadd.f32 1e-05, %v3738_v10 }
0x14e8   : > { %v3731_v43 = vpop.xlane.xlu1 %3730 }
0x14e9   : > { %5060 = vrsqrt.f32 %v3742_v39  ;;  %v3739_v54 = vmul.f32 0.03125, %v3731_v43 }
0x14eb   : > { %v3743_v2 = vadd.f32 1e-05, %v3739_v54 }
0x14ed   : > { %5062 = vrsqrt.f32 %v3743_v2 }
0x14f3   : > { %v5061_v8 = vpop.eup %5060 }
0x14f4   : > { %v3750_v55 = vmul.f32 %v5061_v8, %v3718_v14 }
0x14f6   : > { %v3754_v18 = vmul.f32 %v3750_v55, %v5620_v35 }
0x14f7   : > { %v5063_v58 = vpop.eup %5062 }
0x14f8   : > { %v3751_v32 = vmul.f32 %v5063_v58, %v3719_v40  ;;  %v3758_v5 = vadd.f32 %v3754_v18, %v5623_v47 }
0x14fa   : > { %4689 = vmatprep.mubr.msk.f32.mxu0 %vm296_vm0, %v3758_v5  ;;  %v3755_v49 = vmul.f32 %v3751_v32, %v5620_v35 }
0x14fc   : > { %v3759_v45 = vadd.f32 %v3755_v49, %v5623_v47 }
0x14fe   : > { %4690 = vmatmul.mubr.msk.f32.vlgmr.msra.gmra.mrb[42].mxu0 %vm296_vm0, %v3759_v45 }
0x1514   : > { %v3737_v0 = vpop.xlane.xlu1 %3736 }
0x1515   : > { %v3741_v15 = vmul.f32 0.03125, %v3737_v0  ;;  %v3734_v31 = vpop.xlane.xlu0 %3733 }
0x1516   : > { %v3740_v30 = vmul.f32 0.03125, %v3734_v31 }
0x1517   : > { %v3745_v19 = vadd.f32 1e-05, %v3741_v15 }
0x1518   : > { %v3744_v46 = vadd.f32 1e-05, %v3740_v30 }
0x1519   : > { %5064 = vrsqrt.f32 %v3745_v19 }
0x151a   : > { %5066 = vrsqrt.f32 %v3744_v46  ;;  %v4018_v46 = vsub.s32 6, %v5328_v20 }
0x1523   : > { %v5065_v16 = vpop.eup %5064 }
0x1524   : > { %v5067_v48 = vpop.eup %5066  ;;  %v3753_v33 = vmul.f32 %v5065_v16, %v3721_v36  ;;  %v4026_v16 = vsub.s32 7, %v5328_v20 }
0x1525   : > { %v3752_v51 = vmul.f32 %v5067_v48, %v3720_v59  ;;  %v5076_v48 = vld [vmem:[%s6093_s5] sm:$0xff] }
0x1526   : > { %v3757_v9 = vmul.f32 %v3753_v33, %v5620_v35  ;;  %v4019_v33 = vrot.slane %v5076_v48, %v4018_v46 }
0x1527   : > { %v3756_v29 = vmul.f32 %v3752_v51, %v5620_v35 }
0x1528   : > { %v3761_v26 = vadd.f32 %v3757_v9, %v5623_v47 }
0x1529   : > { %v3760_v21 = vadd.f32 %v3756_v29, %v5623_v47  ;;  %v4027_v29 = vrot.slane %v5076_v48, %v4026_v16 }
0x152b   : > { %4692 = vmatprep.mubr.msk.f32.mxu0 %vm296_vm0, %v3760_v21 }
0x152c   : > { %4693 = vmatmul.mubr.msk.f32.gmra.mrb[44].mxu0 %vm296_vm0, %v3761_v26 }
0x15d1   : > { %v4691_v13 = vpop.f32.mrb[42].mxu0 }
0x15d2   : > { %v3846_v53 = vadd.f32 %v4691_v13, %v5644_v38  ;;  %v3840_v41 = vpop.f32.mrb[43].mxu0 }
0x15d3   : > { %v3841_v56 = vadd.f32 %v3840_v41, %v5644_v38 }
0x15d4   : > { %v3860_v42 = vmax.f32 %v3846_v53, 0.0 }
0x15d5   : > { %v3859_v62 = vmax.f32 %v3841_v56, 0.0 }
0x15d7   : > { %4703 = vmatprep.mubr.msk.f32.mxu1 %vm296_vm0, %v3859_v62 }
0x15d8   : > { %4704 = vmatmul.mubr.msk.f32.vlgmr.msra.gmra.mrb[42].mxu1 %vm296_vm0, %v3860_v42 }
0x15ff   : > { %v4694_v35 = vpop.f32.mrb[44].mxu0 }
0x1600   : > { %v3856_v22 = vadd.f32 %v4694_v35, %v5644_v38  ;;  %v3850_v47 = vpop.f32.mrb[45].mxu0 }
0x1601   : > { %v3851_v28 = vadd.f32 %v3850_v47, %v5644_v38 }
0x1602   : > { %v3862_v14 = vmax.f32 %v3856_v22, 0.0 }
0x1603   : > { %v3861_v44 = vmax.f32 %v3851_v28, 0.0 }
0x1605   : > { %4706 = vmatprep.mubr.msk.f32.mxu1 %vm296_vm0, %v3861_v44 }
0x1606   : > { %4707 = vmatmul.mubr.msk.f32.gmra.mrb[44].mxu1 %vm296_vm0, %v3862_v14 }
0x16ab   : > { %v4705_v50 = vpop.f32.mrb[42].mxu1 }
0x16ac   : > { %v3947_v7 = vadd.f32 %v4705_v50, %v5663_v60  ;;  %v3941_v52 = vpop.f32.mrb[43].mxu1 }
0x16ad   : > { %v3942_v40 = vadd.f32 %v3941_v52, %v5663_v60 }
0x16ae   : > { %v3961_v27 = vadd.f32 %v3947_v7, %v5967_v61 }
0x16af   : > { %v3960_v11 = vadd.f32 %v3942_v40, %v5962_v12 }
0x16b0   : > { %v3967_v34 = vsel %vm296_vm0, %v3961_v27, 0.0 }
0x16b1   : > { %3968 = vadd.xlane.f32.xlu1 %v3967_v34  ;;  %v3964_v38 = vsel %vm296_vm0, %v3960_v11, 0.0 }
0x16b2   : > { %3965 = vadd.xlane.f32.xlu0 %v3964_v38 }
0x16d9   : > { %v4708_v25 = vpop.f32.mrb[44].mxu1 }
0x16da   : > { %v3957_v37 = vadd.f32 %v4708_v25, %v5663_v60  ;;  %v3951_v4 = vpop.f32.mrb[45].mxu1 }
0x16db   : > { %v3952_v57 = vadd.f32 %v3951_v4, %v5663_v60 }
0x16dc   : > { %v3963_v36 = vadd.f32 %v3957_v37, %v5972_v23 }
0x16dd   : > { %v3962_v59 = vadd.f32 %v3952_v57, %v5975_v17 }
0x16de   : > { %v3973_v61 = vsel %vm296_vm0, %v3963_v36, 0.0 }
0x16df   : > { %3974 = vadd.xlane.f32.xlu1 %v3973_v61  ;;  %v3970_v12 = vsel %vm296_vm0, %v3962_v59, 0.0 }
0x16e0   : > { %3971 = vadd.xlane.f32.xlu0 %v3970_v12 }
0x173e   : > { %v3969_v3 = vpop.xlane.xlu1 %3968 }
0x173f   : > { %v3977_v63 = vmul.f32 0.03125, %v3969_v3  ;;  %v3966_v24 = vpop.xlane.xlu0 %3965 }
0x1740   : > { %v3976_v1 = vmul.f32 0.03125, %v3966_v24 }
0x1741   : > { %v3981_v6 = vsub.f32 %v3961_v27, %v3977_v63 }
0x1742   : > { %v3980_v10 = vsub.f32 %v3960_v11, %v3976_v1 }
0x1743   : > { %v3985_v39 = vmul.f32 %v3981_v6, %v3981_v6 }
0x1744   : > { %v3984_v43 = vmul.f32 %v3980_v10, %v3980_v10 }
0x1745   : > { %v3991_v60 = vsel %vm296_vm0, %v3985_v39, 0.0 }
0x1746   : > { %3992 = vadd.xlane.f32.xlu1 %v3991_v60  ;;  %v3988_v23 = vsel %vm296_vm0, %v3984_v43, 0.0 }
0x1747   : > { %3989 = vadd.xlane.f32.xlu0 %v3988_v23 }
0x176c   : > { %v3975_v17 = vpop.xlane.xlu1 %3974 }
0x176d   : > { %v3979_v54 = vmul.f32 0.03125, %v3975_v17  ;;  %v3972_v2 = vpop.xlane.xlu0 %3971 }
0x176e   : > { %v3978_v8 = vmul.f32 0.03125, %v3972_v2 }
0x176f   : > { %v3983_v55 = vsub.f32 %v3963_v36, %v3979_v54 }
0x1770   : > { %v3982_v18 = vsub.f32 %v3962_v59, %v3978_v8 }
0x1771   : > { %v3987_v58 = vmul.f32 %v3983_v55, %v3983_v55 }
0x1772   : > { %v3986_v32 = vmul.f32 %v3982_v18, %v3982_v18 }
0x1773   : > { %v3997_v5 = vsel %vm296_vm0, %v3987_v58, 0.0 }
0x1774   : > { %3998 = vadd.xlane.f32.xlu1 %v3997_v5  ;;  %v3994_v49 = vsel %vm296_vm0, %v3986_v32, 0.0 }
0x1775   : > { %3995 = vadd.xlane.f32.xlu0 %v3994_v49 }
0x17d3   : > { %v3993_v45 = vpop.xlane.xlu1 %3992 }
0x17d4   : > { %v4001_v0 = vmul.f32 0.03125, %v3993_v45  ;;  %v3990_v15 = vpop.xlane.xlu0 %3989 }
0x17d5   : > { %v4000_v31 = vmul.f32 0.03125, %v3990_v15 }
0x17d6   : > { %v4005_v30 = vadd.f32 1e-05, %v4001_v0 }
0x17d7   : > { %v4004_v19 = vadd.f32 1e-05, %v4000_v31 }
0x17d8   : > { %5068 = vrsqrt.f32 %v4005_v30 }
0x17d9   : > { %5070 = vrsqrt.f32 %v4004_v19 }
0x17e2   : > { %v5069_v51 = vpop.eup %5068 }
0x17e3   : > { %v5071_v9 = vpop.eup %5070  ;;  %v4013_v21 = vmul.f32 %v5069_v51, %v3981_v6 }
0x17e4   : > { %v4012_v26 = vmul.f32 %v5071_v9, %v3980_v10 }
0x17e5   : > { %v4021_v13 = vmul.f32 %v4019_v33, %v4013_v21 }
0x17e6   : > { %v4020_v53 = vmul.f32 %v4019_v33, %v4012_v26 }
0x17e7   : > { %v4029_v41 = vadd.f32 %v4027_v29, %v4021_v13 }
0x17e8   : > { %v4028_v56 = vadd.f32 %v4027_v29, %v4020_v53 }
0x17e9   : > { %4033 = vst.msk [vmem:[%s259_s16 + $0x8] sm:$0xff] %vm296_vm0, %v4029_v41 }
0x17ea   : > { %4032 = vst.msk [vmem:[%s259_s16] sm:$0xff] %vm296_vm0, %v4028_v56 }
0x1801   : > { %v3999_v20 = vpop.xlane.xlu1 %3998 }
0x1802   : > { %v4003_v62 = vmul.f32 0.03125, %v3999_v20  ;;  %v3996_v42 = vpop.xlane.xlu0 %3995 }
0x1803   : > { %v4002_v35 = vmul.f32 0.03125, %v3996_v42 }
0x1804   : > { %v4007_v22 = vadd.f32 1e-05, %v4003_v62 }
0x1805   : > { %v4006_v47 = vadd.f32 1e-05, %v4002_v35 }
0x1806   : > { %5072 = vrsqrt.f32 %v4007_v22 }
0x1807   : > { %5074 = vrsqrt.f32 %v4006_v47 }
0x1810   : > { %v5073_v28 = vpop.eup %5072 }
0x1811   : > { %v5075_v44 = vpop.eup %5074  ;;  %v4015_v14 = vmul.f32 %v5073_v28, %v3983_v55 }
0x1812   : > { %v4014_v50 = vmul.f32 %v5075_v44, %v3982_v18 }
0x1813   : > { %v4023_v7 = vmul.f32 %v4019_v33, %v4015_v14 }
0x1814   : > { %v4022_v52 = vmul.f32 %v4019_v33, %v4014_v50 }
0x1815   : > { %v4031_v40 = vadd.f32 %v4027_v29, %v4023_v7 }
0x1816   : > { %v4030_v27 = vadd.f32 %v4027_v29, %v4022_v52 }
0x1817   : > { %4035 = vst.msk [vmem:[%s259_s16 + $0x18] sm:$0xff] %vm296_vm0, %v4031_v40 }
0x1818   : > { %4034 = vst.msk [vmem:[%s259_s16 + $0x10] sm:$0xff] %vm296_vm0, %v4030_v27 }
0x1819   : > { %5090 = shalt.err (!%p5087_p4)
}
0x181a   : > { %s5091_s11 = scalar_lea.hbm %s6039_s26, 512  ;;  %s5095_s14 = scalar_lea.hbm %s6094_s6, 1024 }
0x181b   : > { %p5092_p7 = scmp.ne.s32.totalorder %s6039_s26, %s5091_s11  ;;  %p5096_p10 = scmp.lt.u32.totalorder %s6039_s26, %s6094_s6 }
0x181c   : > { %p5097_p11 = scmp.lt.u32.totalorder %s5095_s14, %s5091_s11  ;;  %p5099_p13 = scmp.lt.u32.totalorder %s5091_s11, %s6039_s26 }
0x181d   : > { %p5093_p8 = pnand %p5092_p7, %p5221_p5 }
0x181e   : > { %p5098_p12 = por %p5097_p11, %p5096_p10 }
0x181f   : > { %p5094_p9 = pneg %p5093_p8 }
0x1820   : > { %p5100_p0 = por %p5099_p13, %p5098_p12 }
0x1822   : > { %p5101_p1 = pnand %p5100_p0, %p5094_p9 }
0x1824   : > { %5104 = shalt.err (!%p5101_p1)
}
0x1825   : > { %s5146_s17 = smov 128   ;;  %s5147_s19 = smov 8  }
0x1826   : > { %4873 = dma.vmem_to_hbm [thread:$0]  (%p5221_p5), %s6041_s18, 512, %s6039_s26, %s6047_s25, %s5146_s17, %s5146_s17, %s5147_s19  }
0x1827 PF: > { %p4879_p2 = scmp.ge.s32.totalorder %s5139_s24, 2  ;;  %s4065_s20 = sand.u32 1, %s5127_s21  }
0x1828   : > { %s4066_s28 = scalar_lea.sflag [#allocation3], %s4065_s20 }
0x1829   : > { %p4876_p3 = pnand %p4879_p2, %p5225_p6 }
0x182b   : > { %5122 = dma.done.wait (!%p4876_p3), %s4066_s28, 512  }
0x182c   : > { %5124 = vsyncadd (!%p4876_p3), %s4066_s28, 4294966784  ;;  %p16_p4 = scmp.ge.s32.totalorder %s5208_s27, 4   ;;  %s6099_s21 = smov %s5131_s22 }
0x182d   : > { %s6100_s22 = smov %s5135_s23  ;;  %s6101_s23 = smov %s5219_s30 }
0x182e   : > { %s6102_s24 = smov %s5208_s27  ;;  %18 = sbr.rel (!%p16_p4) target bundleno = 3 (0x3), region = 84 }
0x1835   :  { %4071 = vsyncpa [#allocation3], 1 }
0x1836   :  { %4073 = vsyncpa [#allocation3 + $0x1], 1 }

</bundles_post_ra>
